<compile_context>
chip_gen: v6e
topology: v6e:2x2x1
jax: 0.10.0
libtpu: 0.0.40
codegen_flags: <defaults>
</compile_context>

<pallas_src>
import math

import jax
import jax.numpy as jnp
from jax.experimental import pallas as pl
from jax.experimental.pallas import tpu as pltpu


# ------------------------- fused FFN kernel ---------------------------------
_GELU_C = math.sqrt(2.0 / math.pi)


def _gelu_tanh(x):
    # torch.nn.functional.gelu(x, approximate='tanh')
    return 0.5 * x * (1.0 + jnp.tanh(_GELU_C * (x + 0.044715 * x * x * x)))


def _ffn_kernel(x_ref, w1_ref, w2_ref, o_ref):
    x = x_ref[...]                                            # (tm, dim)
    # Linear 1: full-K contraction in one MXU call (no K grid axis).
    h = jnp.dot(x, w1_ref[...], preferred_element_type=jnp.float32)
    # GELU (tanh approximation) -- tanh goes to the EUP slot.
    h = _gelu_tanh(h)
    # Linear 2.
    out = jnp.dot(h.astype(w2_ref.dtype), w2_ref[...],
                  preferred_element_type=jnp.float32)
    o_ref[...] = out.astype(o_ref.dtype)


def feed_forward(x, w1_t, w2_t, *, tm=None):
    """x: (B, S, dim). w1_t: (dim, inner_dim). w2_t: (inner_dim, dim_out).

    Weights are passed transposed relative to nn.Linear's (out, in) layout, so
    the kernel computes x @ W^T exactly like the PyTorch module (bias=False).
    """
    B, S, D = x.shape
    M = B * S
    D1, inner = w1_t.shape
    inner2, dim_out = w2_t.shape
    assert D1 == D and inner2 == inner

    x2 = x.reshape(M, D)

    if tm is None:
        # >= 2 grid steps when possible (v7x has 2 TensorCores), rows a
        # multiple of 8 for the (8, 128) tiling constraint.
        if M >= 128 and M % 64 == 0:
            tm = 64
        else:
            tm = M
    assert M % tm == 0, "row count must divide the row tile"

    grid = (M // tm,)

    out2 = pl.pallas_call(
        _ffn_kernel,
        out_shape=jax.ShapeDtypeStruct((M, dim_out), x.dtype),
        grid_spec=pltpu.PrefetchScalarGridSpec(
            num_scalar_prefetch=0,
            grid=grid,
            in_specs=[
                pl.BlockSpec((tm, D), lambda i: (i, 0)),          # x row tile
                pl.BlockSpec((D, inner), lambda i: (0, 0)),       # W1^T (resident)
                pl.BlockSpec((inner, dim_out), lambda i: (0, 0)), # W2^T (resident)
            ],
            out_specs=pl.BlockSpec((tm, dim_out), lambda i: (i, 0)),
        ),
        compiler_params=pltpu.CompilerParams(
            dimension_semantics=("parallel",),
            vmem_limit_bytes=64 * 1024 * 1024,
        ),
    )(x2, w1_t, w2_t)

    return out2.reshape(B, S, dim_out)


# ------------------------- pure-JAX reference --------------------------------
def reference_forward(x, w1_t, w2_t):
    B, S, D = x.shape
    h = x.reshape(B * S, D) @ w1_t
    h = _gelu_tanh(h)
    out = h @ w2_t
    return out.reshape(B, S, w2_t.shape[1])


# ------------------------------ main -----------------------------------------
if __name__ == "__main__":
    key = jax.random.PRNGKey(0)
    k1, k2, k3 = jax.random.split(key, 3)

    B, S = 2, 64
    DIM = 256
    MULT = 4
    INNER = DIM * MULT          # 1024
    DIM_OUT = DIM               # FeedForward default: dim_out = dim

    x = jax.random.normal(k1, (B, S, DIM), dtype=jnp.float32)
    # nn.Linear weights are (out, in); pass transposed (in, out) for x @ W^T.
    w1 = jax.random.normal(k2, (INNER, DIM), dtype=jnp.float32) * 0.05
    w2 = jax.random.normal(k3, (DIM_OUT, INNER), dtype=jnp.float32) * 0.05

    out = feed_forward(x, w1.T, w2.T)
    out = jax.block_until_ready(out)

    ref = reference_forward(x, w1.T, w2.T)
    ref = jax.block_until_ready(ref)

    assert out.shape == (B, S, DIM_OUT)
    assert jnp.allclose(out, ref, rtol=1e-4, atol=1e-4), (
        float(jnp.max(jnp.abs(out - ref))))
    print("KERNEL_OK")
</pallas_src>

<mosaic_0001>
module attributes {stable_mosaic.version = 11 : i64} {
  func.func @_ffn_kernel(%arg0: i32, %arg1: memref<64x256xf32, #tpu.memory_space<vmem>>, %arg2: memref<256x1024xf32, #tpu.memory_space<vmem>>, %arg3: memref<1024x256xf32, #tpu.memory_space<vmem>>, %arg4: memref<64x256xf32, #tpu.memory_space<vmem>>) attributes {dimension_semantics = [#tpu.dimension_semantics<parallel>], iteration_bounds = array<i64: 2>, scalar_prefetch = 0 : i64, scratch_operands = 0 : i64, tpu.core_type = #tpu.core_type<tc>, window_params = [{transform_indices = @transform_0, window_bounds = array<i64: 64, 256>}, {pipeline_mode = #tpu.pipeline_mode<synchronous>, transform_indices = @transform_1, window_bounds = array<i64: 256, 1024>}, {pipeline_mode = #tpu.pipeline_mode<synchronous>, transform_indices = @transform_2, window_bounds = array<i64: 1024, 256>}, {transform_indices = @transform_3, window_bounds = array<i64: 64, 256>}]} {
    %c0 = arith.constant 0 : index
    %c0_0 = arith.constant 0 : index
    %0 = vector.load %arg1[%c0, %c0_0] : memref<64x256xf32, #tpu.memory_space<vmem>>, vector<64x256xf32>
    %c0_1 = arith.constant 0 : index
    %c0_2 = arith.constant 0 : index
    %1 = vector.load %arg2[%c0_1, %c0_2] : memref<256x1024xf32, #tpu.memory_space<vmem>>, vector<256x1024xf32>
    %cst = arith.constant dense<0.000000e+00> : vector<64x1024xf32>
    %2 = tpu.matmul %0, %1, %cst {dimension_numbers = #tpu.dot_dimension_numbers<[1], [0], [0], [1], [0, 0, 1, 1], [], []>} : vector<64x256xf32>, vector<256x1024xf32>, vector<64x1024xf32> -> vector<64x1024xf32>
    %cst_3 = arith.constant 5.000000e-01 : f32
    %3 = vector.broadcast %cst_3 : f32 to vector<64x1024xf32>
    %4 = arith.mulf %3, %2 : vector<64x1024xf32>
    %cst_4 = arith.constant 4.471500e-02 : f32
    %5 = vector.broadcast %cst_4 : f32 to vector<64x1024xf32>
    %6 = arith.mulf %5, %2 : vector<64x1024xf32>
    %7 = arith.mulf %6, %2 : vector<64x1024xf32>
    %8 = arith.mulf %7, %2 : vector<64x1024xf32>
    %9 = arith.addf %2, %8 : vector<64x1024xf32>
    %cst_5 = arith.constant 0.797884583 : f32
    %10 = vector.broadcast %cst_5 : f32 to vector<64x1024xf32>
    %11 = arith.mulf %10, %9 : vector<64x1024xf32>
    %12 = math.tanh %11 : vector<64x1024xf32>
    %cst_6 = arith.constant 1.000000e+00 : f32
    %13 = vector.broadcast %cst_6 : f32 to vector<64x1024xf32>
    %14 = arith.addf %13, %12 : vector<64x1024xf32>
    %15 = arith.mulf %4, %14 : vector<64x1024xf32>
    %c0_7 = arith.constant 0 : index
    %c0_8 = arith.constant 0 : index
    %16 = vector.load %arg3[%c0_7, %c0_8] : memref<1024x256xf32, #tpu.memory_space<vmem>>, vector<1024x256xf32>
    %cst_9 = arith.constant dense<0.000000e+00> : vector<64x256xf32>
    %17 = tpu.matmul %15, %16, %cst_9 {dimension_numbers = #tpu.dot_dimension_numbers<[1], [0], [0], [1], [0, 0, 1, 1], [], []>} : vector<64x1024xf32>, vector<1024x256xf32>, vector<64x256xf32> -> vector<64x256xf32>
    %c0_10 = arith.constant 0 : index
    %c0_11 = arith.constant 0 : index
    %18 = vector.load %arg4[%c0_10, %c0_11] : memref<64x256xf32, #tpu.memory_space<vmem>>, vector<64x256xf32>
    tpu.vector_store %arg4[%c0_10, %c0_11], %17 {strides = array<i32>} : memref<64x256xf32, #tpu.memory_space<vmem>>, vector<64x256xf32>,
    return
  }
  func.func @transform_0(%arg0: i32) -> (i32, i32) {
    %c0_i32 = arith.constant 0 : i32
    %c0_i32_0 = arith.constant 0 : i32
    return %arg0, %c0_i32 : i32, i32
  }
  func.func @transform_1(%arg0: i32) -> (i32, i32) {
    %c0_i32 = arith.constant 0 : i32
    %c0_i32_0 = arith.constant 0 : i32
    %c0_i32_1 = arith.constant 0 : i32
    return %c0_i32, %c0_i32_0 : i32, i32
  }
  func.func @transform_2(%arg0: i32) -> (i32, i32) {
    %c0_i32 = arith.constant 0 : i32
    %c0_i32_0 = arith.constant 0 : i32
    %c0_i32_1 = arith.constant 0 : i32
    return %c0_i32, %c0_i32_0 : i32, i32
  }
  func.func @transform_3(%arg0: i32) -> (i32, i32) {
    %c0_i32 = arith.constant 0 : i32
    %c0_i32_0 = arith.constant 0 : i32
    return %arg0, %c0_i32 : i32, i32
  }
}

</mosaic_0001>

<bundles_post_ra>
// kernel: tpu_custom_call.1
= control target key start
LH: loop header
LB: loop body
LE: loop exit
PB: predicated region body
PF: predicated region fallthrough
CT: control target
= control target key end

     0   :  { %8 = vsyncpa [#allocation3], 0  ;;  %s3667_s0 = inlined_call_operand.hbm [shape: f32[128,256], index: 0, kind: input, shape index: {}]   ;;  %s3668_s1 = inlined_call_operand.hbm [shape: f32[256,1024], index: 1, kind: input, shape index: {}]   ;;  %s3669_s2 = inlined_call_operand.hbm [shape: f32[1024,256], index: 2, kind: input, shape index: {}]   ;;  %s3670_s3 = inlined_call_operand.hbm [shape: f32[128,256], index: 3, kind: output, shape index: {}]  }
   0x1   :  { %10 = vsyncpa [#allocation3 + $0x1], 0 }
   0x2   :  { %11 = vsyncpa [#allocation6], 0 }
   0x3   :  { %12 = vsyncpa [#allocation4], 0 }
   0x4   :  { %14 = vsyncpa [#allocation4 + $0x1], 0  ;;  %s2757_s12 = smov 0   ;;  %s2759_s13 = smov 0  }
   0x5   :  { %s2761_s14 = smov 0   ;;  %s2763_s15 = smov 0  }
   0x6 LB: > { %s2778_s16 = sadd.s32 4294967295, %s2725_s15   ;;  %s2352_s17 = sadd.s32 4294967294, %s2725_s15   ;;  %s2725_s15 = sphi %s2763_s15, %s3704_s15   ;;  %s2721_s14 = sphi %s2761_s14, %s3703_s14   ;;  %s2717_s13 = sphi %s2759_s13, %s3702_s13   ;;  %s2713_s12 = sphi %s2757_s12, %s3701_s12  }
   0x7   : > { %p40_p0 = scmp.ne.s32.totalorder %s2717_s13, %s2713_s12  ;;  %p3671_p1 = scmp.eq.s32.totalorder %s2778_s16, 0 }
   0x8   : > { %p112_p3 = scmp.eq.s32.totalorder %s2352_s17, 1  ;;  %p2353_p5 = scmp.ge.s32.totalorder %s2725_s15, 1 }
   0x9   : > { %p2787_p4 = por %p3671_p1, %p40_p0  ;;  %p119_p7 = scmp.lt.s32.totalorder %s2725_s15, 3 }
   0xa   : > { %p2792_p6 = por %p112_p3, %p40_p0  ;;  %s2727_s21 = smov [#allocation5]  }
   0xb   : > { %s3679_s18 = scalar_select %p2787_p4, 1, 0 }
   0xc   : > { %s3680_s19 = scalar_select %p2792_p6, 1, 0 }
   0xd   : > { %p2797_p8 = pnand %p2353_p5, %p119_p7  ;;  %s131_s22 = sshll.u32 %s2727_s21, 4  ;;  %s132_s22 = int_to_ptr.vmem [resolvable:$true] %s131_s22 }
   0xe   : > { %s2728_s24 = smov [#allocation7]   ;;  %s2588_s26 = scalar_lea.vmem %s132_s22, 32768 }
   0xf   : > { %s3681_s20 = scalar_select %p2797_p8, 1, 0 }
  0x10   : > { %p2388_p9 = pneg %p2797_p8  ;;  %s144_s25 = sshll.u32 %s2728_s24, 4  ;;  %s145_s25 = int_to_ptr.vmem [resolvable:$true] %s144_s25 }
  0x11   : > { %p2589_p13 = scmp.ne.s32.totalorder %s132_s22, %s2588_s26  ;;  %p2596_p5 = scmp.lt.s32.totalorder %s132_s22, %s132_s22 }
  0x12   : > { %p2806_p11 = pnand %p2388_p9, %p3671_p1  ;;  %p2597_p7 = scmp.lt.s32.totalorder %s2588_s26, %s2588_s26 }
  0x14   : > { %p2579_p12 = pneg %p2806_p11  ;;  %p2598_p10 = por %p2597_p7, %p2596_p5 }
  0x16   : > { %p2591_p0 = pnand %p2589_p13, %p2579_p12 }
  0x18   : > { %p2592_p3 = pneg %p2591_p0 }
  0x1a   : > { %p2599_p9 = pnand %p2598_p10, %p2592_p3 }
  0x1c   : > { %2602 = shalt.err (!%p2599_p9)
}
  0x1d   : > { %s2729_s27 = smov 1024   ;;  %s2730_s28 = smov 64  }
  0x1e   : > { %2391 = dma.hbm_to_vmem [thread:$0]  (!%p2806_p11), %s3668_s1, 32768, %s132_s22, [#allocation6], %s2729_s27, %s2729_s27, %s2730_s28  }
  0x1f   : > { %s2614_s4 = scalar_lea.vmem %s145_s25, 32768  ;;  %p2622_p2 = scmp.lt.s32.totalorder %s145_s25, %s145_s25 }
  0x20   : > { %p2615_p1 = scmp.ne.s32.totalorder %s145_s25, %s2614_s4  ;;  %p2623_p6 = scmp.lt.s32.totalorder %s2614_s4, %s2614_s4 }
  0x22   : > { %p2617_p13 = pnand %p2615_p1, %p2579_p12  ;;  %p2624_p5 = por %p2623_p6, %p2622_p2 }
  0x24   : > { %p2618_p0 = pneg %p2617_p13 }
  0x26   : > { %p2625_p10 = pnand %p2624_p5, %p2618_p0 }
  0x28   : > { %2628 = shalt.err (!%p2625_p10)
}
  0x29   : > { %s2731_s5 = smov 256   ;;  %s2732_s6 = smov 16  }
  0x2a   : > { %2394 = dma.hbm_to_vmem [thread:$0]  (!%p2806_p11), %s3669_s2, 32768, %s145_s25, [#allocation6], %s2731_s5, %s2731_s5, %s2732_s6  }
  0x2b   : > { %s2832_s9 = sadd.s32 1, %s2725_s15   ;;  %s27_s11 = sadd.s32 1, %s2721_s14 }
  0x2c   : > { %s24_s10 = ssub.s32 %s2725_s15, %s2832_s9  ;;  %p34_p2 = scmp.ne.s32.totalorder %s2721_s14, %s2717_s13 }
  0x2d   : > { %p25_p1 = scmp.eq.s32.totalorder %s24_s10, 0  ;;  %p35_p6 = scmp.eq.s32.totalorder %s2725_s15, 0 }
  0x2e   : > { %p3683_p3 = scmp.eq.s32.totalorder %s2778_s16, 1  ;;  %p2405_p9 = scmp.lt.s32.totalorder %s2725_s15, 2 }
  0x2f   : > { %s2841_s17 = scalar_select %p25_p1, %s2721_s14, %s27_s11  }
  0x30   : > { %p36_p12 = por %p35_p6, %p34_p2  ;;  %p2845_p7 = por %p3683_p3, %p34_p2 }
  0x31   : > { %s158_s22 = sand.u32 1, %s2721_s14   ;;  %s2373_s24 = sshll.u32 %s2725_s15, 11 }
  0x32   : > { %s3684_s21 = scalar_select %p2845_p7, 1, 0 }
  0x33   : > { %s2357_s23 = sshll.u32 %s158_s22, 7  ;;  %s2855_s27 = scalar_lea.hbm %s3667_s0, %s2373_s24 }
  0x34   : > { %s162_s28 = scalar_lea.vmem [#allocation2], %s2357_s23  ;;  %p2859_p11 = pnand %p2405_p9, %p36_p12 }
  0x35   : > { %s170_s29 = sshll.u32 %s162_s28, 4  ;;  %s2863_s4 = scalar_lea.sflag [#allocation3], %s158_s22  ;;  %s2857_s29 = int_to_ptr.vmem [resolvable:$true] %s170_s29 }
  0x36   : > { %s2629_s7 = scalar_lea.hbm %s2855_s27, 2048  ;;  %p2631_p0 = pneg %p2859_p11 }
  0x37   : > { %p2630_p13 = scmp.ne.s32.totalorder %s2855_s27, %s2629_s7  ;;  %s2634_s11 = scalar_lea.hbm %s3667_s0, 4096 }
  0x38   : > { %p2635_p1 = scmp.lt.s32.totalorder %s2855_s27, %s3667_s0  ;;  %p2636_p2 = scmp.lt.s32.totalorder %s2634_s11, %s2629_s7 }
  0x39   : > { %p2632_p5 = pnand %p2631_p0, %p2630_p13 }
  0x3a   : > { %p2637_p6 = por %p2636_p2, %p2635_p1 }
  0x3b   : > { %p2633_p10 = pneg %p2632_p5 }
  0x3d   : > { %p2638_p12 = pnand %p2637_p6, %p2633_p10 }
  0x3f   : > { %2641 = shalt.err (!%p2638_p12)
}
  0x40   : > { %s2642_s22 = scalar_lea.vmem %s2857_s29, 2048  ;;  %s2733_s25 = smov [#allocation2]  }
  0x41   : > { %p2643_p3 = scmp.ne.s32.totalorder %s2857_s29, %s2642_s22  ;;  %s2647_s26 = sshll.u32 %s2733_s25, 4  ;;  %s2648_s26 = int_to_ptr.vmem [resolvable:$false] %s2647_s26 }
  0x42   : > { %s2649_s28 = scalar_lea.vmem %s2648_s26, 4096  ;;  %p2650_p5 = scmp.lt.s32.totalorder %s2857_s29, %s2648_s26 }
  0x43   : > { %p2645_p9 = pnand %p2643_p3, %p2631_p0  ;;  %p2651_p7 = scmp.lt.s32.totalorder %s2649_s28, %s2642_s22 }
  0x45   : > { %p2646_p13 = pneg %p2645_p9  ;;  %p2652_p4 = por %p2651_p7, %p2650_p5 }
  0x47   : > { %p2653_p8 = pnand %p2652_p4, %p2646_p13 }
  0x49   : > { %2656 = shalt.err (!%p2653_p8)
}
  0x4a   : > { %2398 = dma.hbm_to_vmem [thread:$0]  (!%p2859_p11), %s2855_s27, 2048, %s2857_s29, %s2863_s4, %s2731_s5, %s2731_s5, %s2732_s6  }
  0x4b   : > { %p3686_p0 = scmp.ne.s32.totalorder %s3681_s20, 0 }
  0x4d   : > { %182 = sbr.rel (%p3686_p0) target bundleno = 722 (0x2d2), region = 32 }
  0x52   : > { %s2890_s7 = sand.u32 1, %s2717_s13   ;;  %p3687_p4 = scmp.ne.s32.totalorder %s3679_s18, 0 }
  0x53   : > { %s2362_s8 = sshll.u32 %s2890_s7, 7  ;;  %s185_s10 = scalar_lea.sflag [#allocation3], %s2890_s7 }
  0x54   : > { %s2896_s30 = scalar_lea.vmem [#allocation2], %s2362_s8 }
  0x55   : > { %2700 = dma.done.wait (%p3687_p4), %s185_s10, 2048  }
  0x56   : > { %2702 = vsyncadd (%p3687_p4), %s185_s10, 4294965248  ;;  %p3688_p8 = scmp.eq.s32.totalorder %s2778_s16, 0 }
  0x58   : > { %2704 = dma.done.wait (%p3688_p8), [#allocation6], 65536   ;;  %p3689_p7 = pmov %p3688_p8 }
  0x59   : > { %v358_v0 = vld [vmem:[#allocation5 + $0x3c8] sm:$0xff]  ;;  %v360_v1 = vld [vmem:[#allocation5 + $0x3d8] sm:$0xff]  ;;  %v357_v2 = vld [vmem:[#allocation5 + $0x3c0] sm:$0xff]  ;;  %s3587_s18 = scalar_lea.vmem [#allocation8], %s2362_s8  ;;  %s2375_s20 = sshll.u32 %s2778_s16, 11 }
  0x5a   : > { %2706 = vsyncadd (%p3689_p7), [#allocation6], 4294901760  ;;  %493 = vmatprep.subr.mxu0 %v358_v0  ;;  %606 = vmatprep.subr.mxu1 %v360_v1  ;;  %v359_v3 = vld [vmem:[#allocation5 + $0x3d0] sm:$0xff]  ;;  %v350_v4 = vld [vmem:[#allocation5 + $0x388] sm:$0xff]  ;;  %s2260_s5 = sshll.u32 %s3587_s18, 4  ;;  %s3620_s29 = scalar_lea.hbm %s3670_s3, %s2375_s20  ;;  %s3622_s5 = int_to_ptr.vmem [resolvable:$true] %s2260_s5 }
  0x5b   : > { %v352_v5 = vld [vmem:[#allocation5 + $0x398] sm:$0xff]  ;;  %494 = vmatpush1.msra.mxu0 %v357_v2  ;;  %607 = vmatpush1.msra.mxu1 %v359_v3  ;;  %v349_v6 = vld [vmem:[#allocation5 + $0x380] sm:$0xff]  ;;  %v351_v7 = vld [vmem:[#allocation5 + $0x390] sm:$0xff]  ;;  %s2246_s16 = scalar_lea.sflag [#allocation4], %s2890_s7  ;;  %s2657_s4 = scalar_lea.vmem %s3622_s5, 2048 }
  0x5c   : > { %v342_v8 = vld [vmem:[#allocation5 + $0x348] sm:$0xff]  ;;  %495 = vmatprep.subr.mxu0 %v350_v4  ;;  %608 = vmatprep.subr.mxu1 %v352_v5  ;;  %v344_v9 = vld [vmem:[#allocation5 + $0x358] sm:$0xff]  ;;  %v341_v10 = vld [vmem:[#allocation5 + $0x340] sm:$0xff]  ;;  %p2658_p11 = scmp.ne.s32.totalorder %s3622_s5, %s2657_s4  ;;  %p3698_p10 = scmp.ne.s32.totalorder %s3684_s21, 0 }
  0x5d   : > { %v343_v11 = vld [vmem:[#allocation5 + $0x350] sm:$0xff]  ;;  %496 = vmatpush1.msra.mxu0 %v349_v6  ;;  %609 = vmatpush1.msra.mxu1 %v351_v7  ;;  %v334_v12 = vld [vmem:[#allocation5 + $0x308] sm:$0xff]  ;;  %v336_v13 = vld [vmem:[#allocation5 + $0x318] sm:$0xff]  ;;  %s2734_s11 = smov [#allocation8]  }
  0x5e   : > { %497 = vmatprep.subr.mxu0 %v342_v8  ;;  %610 = vmatprep.subr.mxu1 %v344_v9  ;;  %v333_v14 = vld [vmem:[#allocation5 + $0x300] sm:$0xff]  ;;  %v335_v15 = vld [vmem:[#allocation5 + $0x310] sm:$0xff]  ;;  %v326_v16 = vld [vmem:[#allocation5 + $0x2c8] sm:$0xff]  ;;  %p2659_p1 = pnand %p2658_p11, %p3698_p10  ;;  %s2661_s23 = sshll.u32 %s2734_s11, 4  ;;  %s2662_s23 = int_to_ptr.vmem [resolvable:$false] %s2661_s23 }
  0x5f   : > { %498 = vmatpush1.msra.mxu0 %v341_v10  ;;  %611 = vmatpush1.msra.mxu1 %v343_v11  ;;  %v328_v17 = vld [vmem:[#allocation5 + $0x2d8] sm:$0xff]  ;;  %v325_v18 = vld [vmem:[#allocation5 + $0x2c0] sm:$0xff]  ;;  %v327_v19 = vld [vmem:[#allocation5 + $0x2d0] sm:$0xff]  ;;  %s2663_s24 = scalar_lea.vmem %s2662_s23, 4096  ;;  %p2664_p6 = scmp.lt.s32.totalorder %s3622_s5, %s2662_s23 }
  0x60   : > { %499 = vmatprep.subr.mxu0 %v334_v12  ;;  %612 = vmatprep.subr.mxu1 %v336_v13  ;;  %v318_v20 = vld [vmem:[#allocation5 + $0x288] sm:$0xff]  ;;  %v320_v21 = vld [vmem:[#allocation5 + $0x298] sm:$0xff]  ;;  %v317_v22 = vld [vmem:[#allocation5 + $0x280] sm:$0xff]  ;;  %p2660_p2 = pneg %p2659_p1  ;;  %p2665_p12 = scmp.lt.s32.totalorder %s2663_s24, %s2657_s4 }
  0x61   : > { %500 = vmatpush1.msra.mxu0 %v333_v14  ;;  %613 = vmatpush1.msra.mxu1 %v335_v15  ;;  %v319_v23 = vld [vmem:[#allocation5 + $0x290] sm:$0xff]  ;;  %v310_v24 = vld [vmem:[#allocation5 + $0x248] sm:$0xff]  ;;  %v312_v25 = vld [vmem:[#allocation5 + $0x258] sm:$0xff] }
  0x62   : > { %501 = vmatprep.subr.mxu0 %v326_v16  ;;  %614 = vmatprep.subr.mxu1 %v328_v17  ;;  %v309_v26 = vld [vmem:[#allocation5 + $0x240] sm:$0xff]  ;;  %v311_v27 = vld [vmem:[#allocation5 + $0x250] sm:$0xff]  ;;  %v302_v28 = vld [vmem:[#allocation5 + $0x208] sm:$0xff]  ;;  %p2666_p3 = por %p2665_p12, %p2664_p6 }
  0x63   : > { %502 = vmatpush1.msra.mxu0 %v325_v18  ;;  %615 = vmatpush1.msra.mxu1 %v327_v19  ;;  %v304_v29 = vld [vmem:[#allocation5 + $0x218] sm:$0xff]  ;;  %v301_v30 = vld [vmem:[#allocation5 + $0x200] sm:$0xff]  ;;  %v303_v31 = vld [vmem:[#allocation5 + $0x210] sm:$0xff] }
  0x64   : > { %503 = vmatprep.subr.mxu0 %v318_v20  ;;  %616 = vmatprep.subr.mxu1 %v320_v21  ;;  %v294_v32 = vld [vmem:[#allocation5 + $0x1c8] sm:$0xff]  ;;  %v296_v33 = vld [vmem:[#allocation5 + $0x1d8] sm:$0xff]  ;;  %v293_v34 = vld [vmem:[#allocation5 + $0x1c0] sm:$0xff]  ;;  %p2667_p9 = pnand %p2666_p3, %p2660_p2 }
  0x65   : > { %504 = vmatpush1.msra.mxu0 %v317_v22  ;;  %617 = vmatpush1.msra.mxu1 %v319_v23  ;;  %v295_v35 = vld [vmem:[#allocation5 + $0x1d0] sm:$0xff]  ;;  %v286_v36 = vld [vmem:[#allocation5 + $0x188] sm:$0xff]  ;;  %v288_v37 = vld [vmem:[#allocation5 + $0x198] sm:$0xff] }
  0x66   : > { %505 = vmatprep.subr.mxu0 %v310_v24  ;;  %618 = vmatprep.subr.mxu1 %v312_v25  ;;  %v285_v38 = vld [vmem:[#allocation5 + $0x180] sm:$0xff]  ;;  %v287_v39 = vld [vmem:[#allocation5 + $0x190] sm:$0xff]  ;;  %v278_v40 = vld [vmem:[#allocation5 + $0x148] sm:$0xff] }
  0x67   : > { %506 = vmatpush1.msra.mxu0 %v309_v26  ;;  %619 = vmatpush1.msra.mxu1 %v311_v27  ;;  %v280_v41 = vld [vmem:[#allocation5 + $0x158] sm:$0xff]  ;;  %v277_v42 = vld [vmem:[#allocation5 + $0x140] sm:$0xff]  ;;  %v279_v43 = vld [vmem:[#allocation5 + $0x150] sm:$0xff] }
  0x68   : > { %507 = vmatprep.subr.mxu0 %v302_v28  ;;  %620 = vmatprep.subr.mxu1 %v304_v29  ;;  %v270_v44 = vld [vmem:[#allocation5 + $0x108] sm:$0xff]  ;;  %v272_v45 = vld [vmem:[#allocation5 + $0x118] sm:$0xff]  ;;  %v269_v46 = vld [vmem:[#allocation5 + $0x100] sm:$0xff] }
  0x69   : > { %508 = vmatpush1.msra.mxu0 %v301_v30  ;;  %621 = vmatpush1.msra.mxu1 %v303_v31  ;;  %v271_v47 = vld [vmem:[#allocation5 + $0x110] sm:$0xff]  ;;  %v262_v48 = vld [vmem:[#allocation5 + $0xc8] sm:$0xff]  ;;  %v264_v49 = vld [vmem:[#allocation5 + $0xd8] sm:$0xff] }
  0x6a   : > { %509 = vmatprep.subr.mxu0 %v294_v32  ;;  %622 = vmatprep.subr.mxu1 %v296_v33  ;;  %v261_v50 = vld [vmem:[#allocation5 + $0xc0] sm:$0xff]  ;;  %v263_v51 = vld [vmem:[#allocation5 + $0xd0] sm:$0xff]  ;;  %v254_v52 = vld [vmem:[#allocation5 + $0x88] sm:$0xff] }
  0x6b   : > { %510 = vmatpush1.msra.mxu0 %v293_v34  ;;  %623 = vmatpush1.msra.mxu1 %v295_v35  ;;  %v256_v53 = vld [vmem:[#allocation5 + $0x98] sm:$0xff]  ;;  %v253_v54 = vld [vmem:[#allocation5 + $0x80] sm:$0xff]  ;;  %v255_v55 = vld [vmem:[#allocation5 + $0x90] sm:$0xff] }
  0x6c   : > { %511 = vmatprep.subr.mxu0 %v286_v36  ;;  %624 = vmatprep.subr.mxu1 %v288_v37  ;;  %v246_v56 = vld [vmem:[#allocation5 + $0x48] sm:$0xff]  ;;  %v248_v57 = vld [vmem:[#allocation5 + $0x58] sm:$0xff]  ;;  %v245_v58 = vld [vmem:[#allocation5 + $0x40] sm:$0xff] }
  0x6d   : > { %512 = vmatpush1.msra.mxu0 %v285_v38  ;;  %625 = vmatpush1.msra.mxu1 %v287_v39  ;;  %v247_v59 = vld [vmem:[#allocation5 + $0x50] sm:$0xff]  ;;  %v238_v60 = vld [vmem:[#allocation5 + $0x8] sm:$0xff]  ;;  %v240_v61 = vld [vmem:[#allocation5 + $0x18] sm:$0xff] }
  0x6e   : > { %513 = vmatprep.subr.mxu0 %v278_v40  ;;  %626 = vmatprep.subr.mxu1 %v280_v41  ;;  %v237_v62 = vld [vmem:[#allocation5] sm:$0xff]  ;;  %v239_v63 = vld [vmem:[#allocation5 + $0x10] sm:$0xff]  ;;  %v486_v0 = vld [vmem:[#allocation5 + $0x7c8] sm:$0xff] }
  0x6f   : > { %514 = vmatpush1.msra.mxu0 %v277_v42  ;;  %627 = vmatpush1.msra.mxu1 %v279_v43  ;;  %v488_v1 = vld [vmem:[#allocation5 + $0x7d8] sm:$0xff]  ;;  %v485_v2 = vld [vmem:[#allocation5 + $0x7c0] sm:$0xff]  ;;  %v487_v3 = vld [vmem:[#allocation5 + $0x7d0] sm:$0xff] }
  0x70   : > { %515 = vmatprep.subr.mxu0 %v270_v44  ;;  %628 = vmatprep.subr.mxu1 %v272_v45  ;;  %v478_v4 = vld [vmem:[#allocation5 + $0x788] sm:$0xff]  ;;  %v480_v5 = vld [vmem:[#allocation5 + $0x798] sm:$0xff]  ;;  %v477_v6 = vld [vmem:[#allocation5 + $0x780] sm:$0xff] }
  0x71   : > { %516 = vmatpush1.msra.mxu0 %v269_v46  ;;  %629 = vmatpush1.msra.mxu1 %v271_v47  ;;  %v479_v7 = vld [vmem:[#allocation5 + $0x790] sm:$0xff]  ;;  %v470_v8 = vld [vmem:[#allocation5 + $0x748] sm:$0xff]  ;;  %v472_v9 = vld [vmem:[#allocation5 + $0x758] sm:$0xff] }
  0x72   : > { %517 = vmatprep.subr.mxu0 %v262_v48  ;;  %630 = vmatprep.subr.mxu1 %v264_v49  ;;  %v469_v10 = vld [vmem:[#allocation5 + $0x740] sm:$0xff]  ;;  %v471_v11 = vld [vmem:[#allocation5 + $0x750] sm:$0xff]  ;;  %v462_v12 = vld [vmem:[#allocation5 + $0x708] sm:$0xff] }
  0x73   : > { %518 = vmatpush1.msra.mxu0 %v261_v50  ;;  %631 = vmatpush1.msra.mxu1 %v263_v51  ;;  %v464_v13 = vld [vmem:[#allocation5 + $0x718] sm:$0xff]  ;;  %v461_v14 = vld [vmem:[#allocation5 + $0x700] sm:$0xff]  ;;  %v463_v15 = vld [vmem:[#allocation5 + $0x710] sm:$0xff] }
  0x74   : > { %519 = vmatprep.subr.mxu0 %v254_v52  ;;  %632 = vmatprep.subr.mxu1 %v256_v53  ;;  %v454_v16 = vld [vmem:[#allocation5 + $0x6c8] sm:$0xff]  ;;  %v456_v17 = vld [vmem:[#allocation5 + $0x6d8] sm:$0xff]  ;;  %v453_v18 = vld [vmem:[#allocation5 + $0x6c0] sm:$0xff] }
  0x75   : > { %520 = vmatpush1.msra.mxu0 %v253_v54  ;;  %633 = vmatpush1.msra.mxu1 %v255_v55  ;;  %v455_v19 = vld [vmem:[#allocation5 + $0x6d0] sm:$0xff]  ;;  %v446_v20 = vld [vmem:[#allocation5 + $0x688] sm:$0xff]  ;;  %v448_v21 = vld [vmem:[#allocation5 + $0x698] sm:$0xff] }
  0x76   : > { %521 = vmatprep.subr.mxu0 %v246_v56  ;;  %634 = vmatprep.subr.mxu1 %v248_v57  ;;  %v445_v22 = vld [vmem:[#allocation5 + $0x680] sm:$0xff]  ;;  %v447_v23 = vld [vmem:[#allocation5 + $0x690] sm:$0xff]  ;;  %v438_v24 = vld [vmem:[#allocation5 + $0x648] sm:$0xff] }
  0x77   : > { %522 = vmatpush1.msra.mxu0 %v245_v58  ;;  %635 = vmatpush1.msra.mxu1 %v247_v59  ;;  %v440_v25 = vld [vmem:[#allocation5 + $0x658] sm:$0xff]  ;;  %v437_v26 = vld [vmem:[#allocation5 + $0x640] sm:$0xff]  ;;  %v439_v27 = vld [vmem:[#allocation5 + $0x650] sm:$0xff] }
  0x78   : > { %523 = vmatprep.subr.mxu0 %v238_v60  ;;  %636 = vmatprep.subr.mxu1 %v240_v61  ;;  %v430_v28 = vld [vmem:[#allocation5 + $0x608] sm:$0xff]  ;;  %v432_v29 = vld [vmem:[#allocation5 + $0x618] sm:$0xff]  ;;  %v429_v30 = vld [vmem:[#allocation5 + $0x600] sm:$0xff] }
  0x79   : > { %524 = vmatpush1.msra.mxu0 %v237_v62  ;;  %637 = vmatpush1.msra.mxu1 %v239_v63  ;;  %v431_v31 = vld [vmem:[#allocation5 + $0x610] sm:$0xff]  ;;  %v422_v32 = vld [vmem:[#allocation5 + $0x5c8] sm:$0xff]  ;;  %v424_v33 = vld [vmem:[#allocation5 + $0x5d8] sm:$0xff] }
  0x7a   : > { %525 = vmatprep.subr.mxu0 %v486_v0  ;;  %638 = vmatprep.subr.mxu1 %v488_v1  ;;  %v421_v34 = vld [vmem:[#allocation5 + $0x5c0] sm:$0xff]  ;;  %v423_v35 = vld [vmem:[#allocation5 + $0x5d0] sm:$0xff]  ;;  %v414_v36 = vld [vmem:[#allocation5 + $0x588] sm:$0xff] }
  0x7b   : > { %526 = vmatpush2.msra.mxu0 %v485_v2  ;;  %639 = vmatpush2.msra.mxu1 %v487_v3  ;;  %v416_v37 = vld [vmem:[#allocation5 + $0x598] sm:$0xff]  ;;  %v413_v38 = vld [vmem:[#allocation5 + $0x580] sm:$0xff]  ;;  %v415_v39 = vld [vmem:[#allocation5 + $0x590] sm:$0xff] }
  0x7c   : > { %527 = vmatprep.subr.mxu0 %v478_v4  ;;  %640 = vmatprep.subr.mxu1 %v480_v5  ;;  %v406_v40 = vld [vmem:[#allocation5 + $0x548] sm:$0xff]  ;;  %v408_v41 = vld [vmem:[#allocation5 + $0x558] sm:$0xff]  ;;  %v405_v42 = vld [vmem:[#allocation5 + $0x540] sm:$0xff] }
  0x7d   : > { %528 = vmatpush2.msra.mxu0 %v477_v6  ;;  %641 = vmatpush2.msra.mxu1 %v479_v7  ;;  %v407_v43 = vld [vmem:[#allocation5 + $0x550] sm:$0xff]  ;;  %v398_v44 = vld [vmem:[#allocation5 + $0x508] sm:$0xff]  ;;  %v400_v45 = vld [vmem:[#allocation5 + $0x518] sm:$0xff] }
  0x7e   : > { %529 = vmatprep.subr.mxu0 %v470_v8  ;;  %642 = vmatprep.subr.mxu1 %v472_v9  ;;  %v397_v46 = vld [vmem:[#allocation5 + $0x500] sm:$0xff]  ;;  %v399_v47 = vld [vmem:[#allocation5 + $0x510] sm:$0xff]  ;;  %v390_v48 = vld [vmem:[#allocation5 + $0x4c8] sm:$0xff] }
  0x7f   : > { %530 = vmatpush2.msra.mxu0 %v469_v10  ;;  %643 = vmatpush2.msra.mxu1 %v471_v11  ;;  %v392_v49 = vld [vmem:[#allocation5 + $0x4d8] sm:$0xff]  ;;  %v389_v50 = vld [vmem:[#allocation5 + $0x4c0] sm:$0xff]  ;;  %v391_v51 = vld [vmem:[#allocation5 + $0x4d0] sm:$0xff] }
  0x80   : > { %531 = vmatprep.subr.mxu0 %v462_v12  ;;  %644 = vmatprep.subr.mxu1 %v464_v13  ;;  %v382_v52 = vld [vmem:[#allocation5 + $0x488] sm:$0xff]  ;;  %v384_v53 = vld [vmem:[#allocation5 + $0x498] sm:$0xff]  ;;  %v381_v54 = vld [vmem:[#allocation5 + $0x480] sm:$0xff] }
  0x81   : > { %532 = vmatpush2.msra.mxu0 %v461_v14  ;;  %645 = vmatpush2.msra.mxu1 %v463_v15  ;;  %v383_v55 = vld [vmem:[#allocation5 + $0x490] sm:$0xff]  ;;  %v374_v56 = vld [vmem:[#allocation5 + $0x448] sm:$0xff]  ;;  %v376_v57 = vld [vmem:[#allocation5 + $0x458] sm:$0xff] }
  0x82   : > { %533 = vmatprep.subr.mxu0 %v454_v16  ;;  %646 = vmatprep.subr.mxu1 %v456_v17  ;;  %v373_v58 = vld [vmem:[#allocation5 + $0x440] sm:$0xff]  ;;  %v375_v59 = vld [vmem:[#allocation5 + $0x450] sm:$0xff]  ;;  %v366_v60 = vld [vmem:[#allocation5 + $0x408] sm:$0xff] }
  0x83   : > { %534 = vmatpush2.msra.mxu0 %v453_v18  ;;  %647 = vmatpush2.msra.mxu1 %v455_v19  ;;  %v368_v61 = vld [vmem:[#allocation5 + $0x418] sm:$0xff]  ;;  %v365_v62 = vld [vmem:[#allocation5 + $0x400] sm:$0xff]  ;;  %v2907_v63 = vld [vmem:[%s2896_s30 + $0x8] sm:$0xff] }
  0x84   : > { %535 = vmatprep.subr.mxu0 %v446_v20  ;;  %648 = vmatprep.subr.mxu1 %v448_v21  ;;  %v367_v0 = vld [vmem:[#allocation5 + $0x410] sm:$0xff]  ;;  %v2910_v1 = vld [vmem:[%s2896_s30] sm:$0xff]  ;;  %v362_v2 = vld [vmem:[#allocation5 + $0x3e8] sm:$0xff] }
  0x85   : > { %536 = vmatpush2.msra.mxu0 %v445_v22  ;;  %649 = vmatpush2.msra.mxu1 %v447_v23  ;;  %v364_v3 = vld [vmem:[#allocation5 + $0x3f8] sm:$0xff]  ;;  %v361_v4 = vld [vmem:[#allocation5 + $0x3e0] sm:$0xff]  ;;  %v363_v5 = vld [vmem:[#allocation5 + $0x3f0] sm:$0xff] }
  0x86   : > { %537 = vmatprep.subr.mxu0 %v438_v24  ;;  %650 = vmatprep.subr.mxu1 %v440_v25  ;;  %v354_v6 = vld [vmem:[#allocation5 + $0x3a8] sm:$0xff]  ;;  %v356_v7 = vld [vmem:[#allocation5 + $0x3b8] sm:$0xff]  ;;  %v353_v8 = vld [vmem:[#allocation5 + $0x3a0] sm:$0xff] }
  0x87   : > { %538 = vmatpush2.msra.mxu0 %v437_v26  ;;  %651 = vmatpush2.msra.mxu1 %v439_v27  ;;  %v355_v9 = vld [vmem:[#allocation5 + $0x3b0] sm:$0xff]  ;;  %v346_v10 = vld [vmem:[#allocation5 + $0x368] sm:$0xff]  ;;  %v348_v11 = vld [vmem:[#allocation5 + $0x378] sm:$0xff] }
  0x88   : > { %539 = vmatprep.subr.mxu0 %v430_v28  ;;  %652 = vmatprep.subr.mxu1 %v432_v29  ;;  %v345_v12 = vld [vmem:[#allocation5 + $0x360] sm:$0xff]  ;;  %v347_v13 = vld [vmem:[#allocation5 + $0x370] sm:$0xff]  ;;  %v2917_v14 = vld [vmem:[%s2896_s30 + $0x18] sm:$0xff] }
  0x89   : > { %540 = vmatpush2.msra.mxu0 %v429_v30  ;;  %653 = vmatpush2.msra.mxu1 %v431_v31  ;;  %v338_v15 = vld [vmem:[#allocation5 + $0x328] sm:$0xff]  ;;  %v340_v16 = vld [vmem:[#allocation5 + $0x338] sm:$0xff]  ;;  %v2920_v17 = vld [vmem:[%s2896_s30 + $0x10] sm:$0xff] }
  0x8a   : > { %541 = vmatprep.subr.mxu0 %v422_v32  ;;  %654 = vmatprep.subr.mxu1 %v424_v33  ;;  %v337_v18 = vld [vmem:[#allocation5 + $0x320] sm:$0xff]  ;;  %v339_v19 = vld [vmem:[#allocation5 + $0x330] sm:$0xff]  ;;  %v330_v20 = vld [vmem:[#allocation5 + $0x2e8] sm:$0xff] }
  0x8b   : > { %542 = vmatpush2.msra.mxu0 %v421_v34  ;;  %655 = vmatpush2.msra.mxu1 %v423_v35  ;;  %v332_v21 = vld [vmem:[#allocation5 + $0x2f8] sm:$0xff]  ;;  %v329_v22 = vld [vmem:[#allocation5 + $0x2e0] sm:$0xff]  ;;  %v331_v23 = vld [vmem:[#allocation5 + $0x2f0] sm:$0xff] }
  0x8c   : > { %543 = vmatprep.subr.mxu0 %v414_v36  ;;  %656 = vmatprep.subr.mxu1 %v416_v37  ;;  %v2927_v24 = vld [vmem:[%s2896_s30 + $0x28] sm:$0xff]  ;;  %v324_v26 = vld [vmem:[#allocation5 + $0x2b8] sm:$0xff]  ;;  %v2930_v27 = vld [vmem:[%s2896_s30 + $0x20] sm:$0xff] }
  0x8d   : > { %544 = vmatpush2.msra.mxu0 %v413_v38  ;;  %657 = vmatpush2.msra.mxu1 %v415_v39  ;;  %v322_v25 = vld [vmem:[#allocation5 + $0x2a8] sm:$0xff]  ;;  %v321_v28 = vld [vmem:[#allocation5 + $0x2a0] sm:$0xff]  ;;  %v323_v29 = vld [vmem:[#allocation5 + $0x2b0] sm:$0xff] }
  0x8e   : > { %545 = vmatprep.subr.mxu0 %v406_v40  ;;  %658 = vmatprep.subr.mxu1 %v408_v41  ;;  %v314_v30 = vld [vmem:[#allocation5 + $0x268] sm:$0xff]  ;;  %v316_v31 = vld [vmem:[#allocation5 + $0x278] sm:$0xff]  ;;  %v313_v32 = vld [vmem:[#allocation5 + $0x260] sm:$0xff] }
  0x8f   : > { %546 = vmatpush2.msra.mxu0 %v405_v42  ;;  %659 = vmatpush2.msra.mxu1 %v407_v43  ;;  %v315_v33 = vld [vmem:[#allocation5 + $0x270] sm:$0xff]  ;;  %v2937_v34 = vld [vmem:[%s2896_s30 + $0x38] sm:$0xff]  ;;  %v306_v35 = vld [vmem:[#allocation5 + $0x228] sm:$0xff] }
  0x90   : > { %547 = vmatprep.subr.mxu0 %v398_v44  ;;  %660 = vmatprep.subr.mxu1 %v400_v45  ;;  %v308_v36 = vld [vmem:[#allocation5 + $0x238] sm:$0xff]  ;;  %v2940_v37 = vld [vmem:[%s2896_s30 + $0x30] sm:$0xff]  ;;  %v305_v38 = vld [vmem:[#allocation5 + $0x220] sm:$0xff] }
  0x91   : > { %548 = vmatpush2.msra.mxu0 %v397_v46  ;;  %661 = vmatpush2.msra.mxu1 %v399_v47  ;;  %v307_v39 = vld [vmem:[#allocation5 + $0x230] sm:$0xff]  ;;  %v298_v40 = vld [vmem:[#allocation5 + $0x1e8] sm:$0xff]  ;;  %v300_v41 = vld [vmem:[#allocation5 + $0x1f8] sm:$0xff] }
  0x92   : > { %549 = vmatprep.subr.mxu0 %v390_v48  ;;  %662 = vmatprep.subr.mxu1 %v392_v49  ;;  %v297_v42 = vld [vmem:[#allocation5 + $0x1e0] sm:$0xff]  ;;  %v299_v43 = vld [vmem:[#allocation5 + $0x1f0] sm:$0xff]  ;;  %v2947_v44 = vld [vmem:[%s2896_s30 + $0x48] sm:$0xff] }
  0x93   : > { %550 = vmatpush2.msra.mxu0 %v389_v50  ;;  %663 = vmatpush2.msra.mxu1 %v391_v51  ;;  %v290_v45 = vld [vmem:[#allocation5 + $0x1a8] sm:$0xff]  ;;  %v292_v46 = vld [vmem:[#allocation5 + $0x1b8] sm:$0xff]  ;;  %v2950_v47 = vld [vmem:[%s2896_s30 + $0x40] sm:$0xff] }
  0x94   : > { %551 = vmatprep.subr.mxu0 %v382_v52  ;;  %664 = vmatprep.subr.mxu1 %v384_v53  ;;  %v289_v48 = vld [vmem:[#allocation5 + $0x1a0] sm:$0xff]  ;;  %v291_v49 = vld [vmem:[#allocation5 + $0x1b0] sm:$0xff]  ;;  %v282_v50 = vld [vmem:[#allocation5 + $0x168] sm:$0xff] }
  0x95   : > { %552 = vmatpush2.msra.mxu0 %v381_v54  ;;  %665 = vmatpush2.msra.mxu1 %v383_v55  ;;  %v284_v51 = vld [vmem:[#allocation5 + $0x178] sm:$0xff]  ;;  %v281_v52 = vld [vmem:[#allocation5 + $0x160] sm:$0xff]  ;;  %v283_v53 = vld [vmem:[#allocation5 + $0x170] sm:$0xff] }
  0x96   : > { %553 = vmatprep.subr.mxu0 %v374_v56  ;;  %666 = vmatprep.subr.mxu1 %v376_v57  ;;  %v2957_v54 = vld [vmem:[%s2896_s30 + $0x58] sm:$0xff]  ;;  %v274_v55 = vld [vmem:[#allocation5 + $0x128] sm:$0xff]  ;;  %v2960_v57 = vld [vmem:[%s2896_s30 + $0x50] sm:$0xff] }
  0x97   : > { %554 = vmatpush2.msra.mxu0 %v373_v58  ;;  %667 = vmatpush2.msra.mxu1 %v375_v59  ;;  %v276_v56 = vld [vmem:[#allocation5 + $0x138] sm:$0xff]  ;;  %v273_v58 = vld [vmem:[#allocation5 + $0x120] sm:$0xff]  ;;  %v275_v59 = vld [vmem:[#allocation5 + $0x130] sm:$0xff] }
  0x98   : > { %555 = vmatprep.subr.mxu0 %v366_v60  ;;  %668 = vmatprep.subr.mxu1 %v368_v61  ;;  %v266_v60 = vld [vmem:[#allocation5 + $0xe8] sm:$0xff]  ;;  %v268_v61 = vld [vmem:[#allocation5 + $0xf8] sm:$0xff] }
  0x99   : > { %556 = vmatpush2.msra.mxu0 %v365_v62  ;;  %557 = vmatprep.mubr.f32.mxu0 %v2907_v63  ;;  %v265_v62 = vld [vmem:[#allocation5 + $0xe0] sm:$0xff] }
  0x9a   : > { %669 = vmatpush2.msra.mxu1 %v367_v0  ;;  %670 = vmatprep.mubr.f32.mxu1 %v2907_v63  ;;  %v267_v0 = vld [vmem:[#allocation5 + $0xf0] sm:$0xff] }
  0x9b   : > { %558 = vmatmul.mubr.f32.vlgmr.msra.gmra.mxu0 %v2910_v1  ;;  %671 = vmatmul.mubr.f32.vlgmr.msra.gmra.mxu1 %v2910_v1 }
  0x9c   : > { %719 = vmatprep.subr.mxu0 %v362_v2  ;;  %832 = vmatprep.subr.mxu1 %v364_v3  ;;  %v2967_v2 = vld [vmem:[%s2896_s30 + $0x68] sm:$0xff] }
  0x9d   : > { %720 = vmatpush1.msra.mxu0 %v361_v4  ;;  %833 = vmatpush1.msra.mxu1 %v363_v5  ;;  %v258_v3 = vld [vmem:[#allocation5 + $0xa8] sm:$0xff]  ;;  %v260_v4 = vld [vmem:[#allocation5 + $0xb8] sm:$0xff]  ;;  %v2970_v5 = vld [vmem:[%s2896_s30 + $0x60] sm:$0xff] }
  0x9e   : > { %721 = vmatprep.subr.mxu0 %v354_v6  ;;  %834 = vmatprep.subr.mxu1 %v356_v7  ;;  %v257_v6 = vld [vmem:[#allocation5 + $0xa0] sm:$0xff]  ;;  %v259_v7 = vld [vmem:[#allocation5 + $0xb0] sm:$0xff] }
  0x9f   : > { %722 = vmatpush1.msra.mxu0 %v353_v8  ;;  %835 = vmatpush1.msra.mxu1 %v355_v9  ;;  %v250_v8 = vld [vmem:[#allocation5 + $0x68] sm:$0xff]  ;;  %v252_v9 = vld [vmem:[#allocation5 + $0x78] sm:$0xff] }
  0xa0   : > { %723 = vmatprep.subr.mxu0 %v346_v10  ;;  %836 = vmatprep.subr.mxu1 %v348_v11  ;;  %v249_v10 = vld [vmem:[#allocation5 + $0x60] sm:$0xff]  ;;  %v251_v11 = vld [vmem:[#allocation5 + $0x70] sm:$0xff] }
  0xa1   : > { %724 = vmatpush1.msra.mxu0 %v345_v12  ;;  %837 = vmatpush1.msra.mxu1 %v347_v13  ;;  %v2977_v12 = vld [vmem:[%s2896_s30 + $0x78] sm:$0xff]  ;;  %v242_v13 = vld [vmem:[#allocation5 + $0x28] sm:$0xff] }
  0xa2   : > { %563 = vmatprep.mubr.f32.mxu0 %v2917_v14  ;;  %676 = vmatprep.mubr.f32.mxu1 %v2917_v14 }
  0xa3   : > { %725 = vmatprep.subr.mxu0 %v338_v15  ;;  %838 = vmatprep.subr.mxu1 %v340_v16  ;;  %v244_v15 = vld [vmem:[#allocation5 + $0x38] sm:$0xff]  ;;  %v2980_v16 = vld [vmem:[%s2896_s30 + $0x70] sm:$0xff] }
  0xa4   : > { %564 = vmatmul.mubr.f32.gmra.mxu0 %v2920_v17  ;;  %677 = vmatmul.mubr.f32.gmra.mxu1 %v2920_v17 }
  0xa5   : > { %726 = vmatpush1.msra.mxu0 %v337_v18  ;;  %839 = vmatpush1.msra.mxu1 %v339_v19  ;;  %v241_v18 = vld [vmem:[#allocation5 + $0x20] sm:$0xff]  ;;  %v243_v19 = vld [vmem:[#allocation5 + $0x30] sm:$0xff] }
  0xa6   : > { %727 = vmatprep.subr.mxu0 %v330_v20  ;;  %840 = vmatprep.subr.mxu1 %v332_v21  ;;  %v490_v20 = vld [vmem:[#allocation5 + $0x7e8] sm:$0xff]  ;;  %v492_v21 = vld [vmem:[#allocation5 + $0x7f8] sm:$0xff] }
  0xa7   : > { %728 = vmatpush1.msra.mxu0 %v329_v22  ;;  %841 = vmatpush1.msra.mxu1 %v331_v23  ;;  %v489_v22 = vld [vmem:[#allocation5 + $0x7e0] sm:$0xff]  ;;  %v491_v23 = vld [vmem:[#allocation5 + $0x7f0] sm:$0xff] }
  0xa8   : > { %569 = vmatprep.mubr.f32.mxu0 %v2927_v24  ;;  %682 = vmatprep.mubr.f32.mxu1 %v2927_v24 }
  0xa9   : > { %729 = vmatprep.subr.mxu0 %v322_v25  ;;  %842 = vmatprep.subr.mxu1 %v324_v26  ;;  %v482_v25 = vld [vmem:[#allocation5 + $0x7a8] sm:$0xff]  ;;  %v484_v26 = vld [vmem:[#allocation5 + $0x7b8] sm:$0xff] }
  0xaa   : > { %570 = vmatmul.mubr.f32.gmra.mxu0 %v2930_v27  ;;  %683 = vmatmul.mubr.f32.gmra.mxu1 %v2930_v27 }
  0xab   : > { %730 = vmatpush1.msra.mxu0 %v321_v28  ;;  %843 = vmatpush1.msra.mxu1 %v323_v29  ;;  %v481_v28 = vld [vmem:[#allocation5 + $0x7a0] sm:$0xff]  ;;  %v483_v29 = vld [vmem:[#allocation5 + $0x7b0] sm:$0xff] }
  0xac   : > { %731 = vmatprep.subr.mxu0 %v314_v30  ;;  %844 = vmatprep.subr.mxu1 %v316_v31  ;;  %v474_v30 = vld [vmem:[#allocation5 + $0x768] sm:$0xff]  ;;  %v476_v31 = vld [vmem:[#allocation5 + $0x778] sm:$0xff] }
  0xad   : > { %732 = vmatpush1.msra.mxu0 %v313_v32  ;;  %845 = vmatpush1.msra.mxu1 %v315_v33  ;;  %v473_v32 = vld [vmem:[#allocation5 + $0x760] sm:$0xff]  ;;  %v475_v33 = vld [vmem:[#allocation5 + $0x770] sm:$0xff] }
  0xae   : > { %575 = vmatprep.mubr.f32.mxu0 %v2937_v34  ;;  %688 = vmatprep.mubr.f32.mxu1 %v2937_v34 }
  0xaf   : > { %733 = vmatprep.subr.mxu0 %v306_v35  ;;  %846 = vmatprep.subr.mxu1 %v308_v36  ;;  %v466_v35 = vld [vmem:[#allocation5 + $0x728] sm:$0xff]  ;;  %v468_v36 = vld [vmem:[#allocation5 + $0x738] sm:$0xff] }
  0xb0   : > { %576 = vmatmul.mubr.f32.gmra.mxu0 %v2940_v37  ;;  %689 = vmatmul.mubr.f32.gmra.mxu1 %v2940_v37 }
  0xb1   : > { %734 = vmatpush1.msra.mxu0 %v305_v38  ;;  %847 = vmatpush1.msra.mxu1 %v307_v39  ;;  %v465_v38 = vld [vmem:[#allocation5 + $0x720] sm:$0xff]  ;;  %v467_v39 = vld [vmem:[#allocation5 + $0x730] sm:$0xff] }
  0xb2   : > { %735 = vmatprep.subr.mxu0 %v298_v40  ;;  %848 = vmatprep.subr.mxu1 %v300_v41  ;;  %v458_v40 = vld [vmem:[#allocation5 + $0x6e8] sm:$0xff]  ;;  %v460_v41 = vld [vmem:[#allocation5 + $0x6f8] sm:$0xff] }
  0xb3   : > { %736 = vmatpush1.msra.mxu0 %v297_v42  ;;  %849 = vmatpush1.msra.mxu1 %v299_v43  ;;  %v457_v42 = vld [vmem:[#allocation5 + $0x6e0] sm:$0xff]  ;;  %v459_v43 = vld [vmem:[#allocation5 + $0x6f0] sm:$0xff] }
  0xb4   : > { %581 = vmatprep.mubr.f32.mxu0 %v2947_v44  ;;  %694 = vmatprep.mubr.f32.mxu1 %v2947_v44 }
  0xb5   : > { %737 = vmatprep.subr.mxu0 %v290_v45  ;;  %850 = vmatprep.subr.mxu1 %v292_v46  ;;  %v450_v45 = vld [vmem:[#allocation5 + $0x6a8] sm:$0xff]  ;;  %v452_v46 = vld [vmem:[#allocation5 + $0x6b8] sm:$0xff] }
  0xb6   : > { %582 = vmatmul.mubr.f32.gmra.mxu0 %v2950_v47  ;;  %695 = vmatmul.mubr.f32.gmra.mxu1 %v2950_v47 }
  0xb7   : > { %738 = vmatpush1.msra.mxu0 %v289_v48  ;;  %851 = vmatpush1.msra.mxu1 %v291_v49  ;;  %v449_v48 = vld [vmem:[#allocation5 + $0x6a0] sm:$0xff]  ;;  %v451_v49 = vld [vmem:[#allocation5 + $0x6b0] sm:$0xff] }
  0xb8   : > { %739 = vmatprep.subr.mxu0 %v282_v50  ;;  %852 = vmatprep.subr.mxu1 %v284_v51  ;;  %v442_v50 = vld [vmem:[#allocation5 + $0x668] sm:$0xff]  ;;  %v444_v51 = vld [vmem:[#allocation5 + $0x678] sm:$0xff] }
  0xb9   : > { %740 = vmatpush1.msra.mxu0 %v281_v52  ;;  %853 = vmatpush1.msra.mxu1 %v283_v53  ;;  %v441_v52 = vld [vmem:[#allocation5 + $0x660] sm:$0xff]  ;;  %v443_v53 = vld [vmem:[#allocation5 + $0x670] sm:$0xff] }
  0xba   : > { %587 = vmatprep.mubr.f32.mxu0 %v2957_v54  ;;  %700 = vmatprep.mubr.f32.mxu1 %v2957_v54 }
  0xbb   : > { %741 = vmatprep.subr.mxu0 %v274_v55  ;;  %854 = vmatprep.subr.mxu1 %v276_v56  ;;  %v434_v55 = vld [vmem:[#allocation5 + $0x628] sm:$0xff]  ;;  %v436_v56 = vld [vmem:[#allocation5 + $0x638] sm:$0xff] }
  0xbc   : > { %588 = vmatmul.mubr.f32.gmra.mxu0 %v2960_v57  ;;  %701 = vmatmul.mubr.f32.gmra.mxu1 %v2960_v57 }
  0xbd   : > { %742 = vmatpush1.msra.mxu0 %v273_v58  ;;  %855 = vmatpush1.msra.mxu1 %v275_v59  ;;  %v433_v58 = vld [vmem:[#allocation5 + $0x620] sm:$0xff]  ;;  %v435_v59 = vld [vmem:[#allocation5 + $0x630] sm:$0xff] }
  0xbe   : > { %743 = vmatprep.subr.mxu0 %v266_v60  ;;  %856 = vmatprep.subr.mxu1 %v268_v61  ;;  %v426_v60 = vld [vmem:[#allocation5 + $0x5e8] sm:$0xff]  ;;  %v428_v61 = vld [vmem:[#allocation5 + $0x5f8] sm:$0xff] }
  0xbf   : > { %744 = vmatpush1.msra.mxu0 %v265_v62  ;;  %857 = vmatpush1.msra.mxu1 %v267_v0  ;;  %v425_v62 = vld [vmem:[#allocation5 + $0x5e0] sm:$0xff]  ;;  %v427_v0 = vld [vmem:[#allocation5 + $0x5f0] sm:$0xff] }
  0xc0   : > { %593 = vmatprep.mubr.f32.mxu0 %v2967_v2  ;;  %706 = vmatprep.mubr.f32.mxu1 %v2967_v2 }
  0xc1   : > { %745 = vmatprep.subr.mxu0 %v258_v3  ;;  %858 = vmatprep.subr.mxu1 %v260_v4  ;;  %v418_v3 = vld [vmem:[#allocation5 + $0x5a8] sm:$0xff]  ;;  %v420_v4 = vld [vmem:[#allocation5 + $0x5b8] sm:$0xff] }
  0xc2   : > { %594 = vmatmul.mubr.f32.gmra.mxu0 %v2970_v5  ;;  %707 = vmatmul.mubr.f32.gmra.mxu1 %v2970_v5 }
  0xc3   : > { %746 = vmatpush1.msra.mxu0 %v257_v6  ;;  %859 = vmatpush1.msra.mxu1 %v259_v7  ;;  %v417_v6 = vld [vmem:[#allocation5 + $0x5a0] sm:$0xff]  ;;  %v419_v7 = vld [vmem:[#allocation5 + $0x5b0] sm:$0xff] }
  0xc4   : > { %747 = vmatprep.subr.mxu0 %v250_v8  ;;  %860 = vmatprep.subr.mxu1 %v252_v9  ;;  %v410_v8 = vld [vmem:[#allocation5 + $0x568] sm:$0xff]  ;;  %v412_v9 = vld [vmem:[#allocation5 + $0x578] sm:$0xff] }
  0xc5   : > { %748 = vmatpush1.msra.mxu0 %v249_v10  ;;  %861 = vmatpush1.msra.mxu1 %v251_v11  ;;  %v409_v10 = vld [vmem:[#allocation5 + $0x560] sm:$0xff]  ;;  %v411_v11 = vld [vmem:[#allocation5 + $0x570] sm:$0xff] }
  0xc6   : > { %599 = vmatprep.mubr.f32.mxu0 %v2977_v12  ;;  %712 = vmatprep.mubr.f32.mxu1 %v2977_v12 }
  0xc7   : > { %749 = vmatprep.subr.mxu0 %v242_v13  ;;  %862 = vmatprep.subr.mxu1 %v244_v15  ;;  %v402_v13 = vld [vmem:[#allocation5 + $0x528] sm:$0xff]  ;;  %v404_v15 = vld [vmem:[#allocation5 + $0x538] sm:$0xff] }
  0xc8   : > { %600 = vmatmul.mubr.f32.gmra.mxu0 %v2980_v16  ;;  %713 = vmatmul.mubr.f32.gmra.mxu1 %v2980_v16 }
  0xc9   : > { %750 = vmatpush1.msra.mxu0 %v241_v18  ;;  %863 = vmatpush1.msra.mxu1 %v243_v19  ;;  %v401_v18 = vld [vmem:[#allocation5 + $0x520] sm:$0xff]  ;;  %v403_v19 = vld [vmem:[#allocation5 + $0x530] sm:$0xff] }
  0xca   : > { %751 = vmatprep.subr.mxu0 %v490_v20  ;;  %864 = vmatprep.subr.mxu1 %v492_v21  ;;  %v394_v20 = vld [vmem:[#allocation5 + $0x4e8] sm:$0xff]  ;;  %v396_v21 = vld [vmem:[#allocation5 + $0x4f8] sm:$0xff] }
  0xcb   : > { %752 = vmatpush2.msra.mxu0 %v489_v22  ;;  %865 = vmatpush2.msra.mxu1 %v491_v23  ;;  %v393_v22 = vld [vmem:[#allocation5 + $0x4e0] sm:$0xff]  ;;  %v395_v23 = vld [vmem:[#allocation5 + $0x4f0] sm:$0xff] }
  0xcc   : > { %753 = vmatprep.subr.mxu0 %v482_v25  ;;  %866 = vmatprep.subr.mxu1 %v484_v26  ;;  %v386_v25 = vld [vmem:[#allocation5 + $0x4a8] sm:$0xff]  ;;  %v388_v26 = vld [vmem:[#allocation5 + $0x4b8] sm:$0xff] }
  0xcd   : > { %754 = vmatpush2.msra.mxu0 %v481_v28  ;;  %867 = vmatpush2.msra.mxu1 %v483_v29  ;;  %v385_v28 = vld [vmem:[#allocation5 + $0x4a0] sm:$0xff]  ;;  %v387_v29 = vld [vmem:[#allocation5 + $0x4b0] sm:$0xff] }
  0xce   : > { %755 = vmatprep.subr.mxu0 %v474_v30  ;;  %868 = vmatprep.subr.mxu1 %v476_v31  ;;  %v378_v30 = vld [vmem:[#allocation5 + $0x468] sm:$0xff]  ;;  %v380_v31 = vld [vmem:[#allocation5 + $0x478] sm:$0xff] }
  0xcf   : > { %756 = vmatpush2.msra.mxu0 %v473_v32  ;;  %869 = vmatpush2.msra.mxu1 %v475_v33  ;;  %v377_v32 = vld [vmem:[#allocation5 + $0x460] sm:$0xff]  ;;  %v379_v33 = vld [vmem:[#allocation5 + $0x470] sm:$0xff] }
  0xd0   : > { %757 = vmatprep.subr.mxu0 %v466_v35  ;;  %870 = vmatprep.subr.mxu1 %v468_v36  ;;  %v370_v35 = vld [vmem:[#allocation5 + $0x428] sm:$0xff]  ;;  %v372_v36 = vld [vmem:[#allocation5 + $0x438] sm:$0xff] }
  0xd1   : > { %758 = vmatpush2.msra.mxu0 %v465_v38  ;;  %871 = vmatpush2.msra.mxu1 %v467_v39  ;;  %v369_v38 = vld [vmem:[#allocation5 + $0x420] sm:$0xff]  ;;  %v371_v39 = vld [vmem:[#allocation5 + $0x430] sm:$0xff] }
  0xd2   : > { %759 = vmatprep.subr.mxu0 %v458_v40  ;;  %872 = vmatprep.subr.mxu1 %v460_v41  ;;  %v1552_v40 = vld [vmem:[#allocation7 + $0xf8] sm:$0xff] }
  0xd3   : > { %760 = vmatpush2.msra.mxu0 %v457_v42  ;;  %873 = vmatpush2.msra.mxu1 %v459_v43  ;;  %v1616_v41 = vld [vmem:[#allocation7 + $0x2f8] sm:$0xff]  ;;  %v1551_v42 = vld [vmem:[#allocation7 + $0xf0] sm:$0xff] }
  0xd4   : > { %761 = vmatprep.subr.mxu0 %v450_v45  ;;  %874 = vmatprep.subr.mxu1 %v452_v46  ;;  %v1615_v43 = vld [vmem:[#allocation7 + $0x2f0] sm:$0xff]  ;;  %v1550_v45 = vld [vmem:[#allocation7 + $0xe8] sm:$0xff] }
  0xd5   : > { %762 = vmatpush2.msra.mxu0 %v449_v48  ;;  %875 = vmatpush2.msra.mxu1 %v451_v49  ;;  %v1614_v46 = vld [vmem:[#allocation7 + $0x2e8] sm:$0xff]  ;;  %v1613_v48 = vld [vmem:[#allocation7 + $0x2e0] sm:$0xff]  ;;  %v1547_v49 = vld [vmem:[#allocation7 + $0xd0] sm:$0xff] }
  0xd6   : > { %763 = vmatprep.subr.mxu0 %v442_v50  ;;  %876 = vmatprep.subr.mxu1 %v444_v51  ;;  %v1611_v50 = vld [vmem:[#allocation7 + $0x2d0] sm:$0xff]  ;;  %v1545_v51 = vld [vmem:[#allocation7 + $0xc0] sm:$0xff] }
  0xd7   : > { %764 = vmatpush2.msra.mxu0 %v441_v52  ;;  %877 = vmatpush2.msra.mxu1 %v443_v53  ;;  %v1609_v52 = vld [vmem:[#allocation7 + $0x2c0] sm:$0xff]  ;;  %v1543_v53 = vld [vmem:[#allocation7 + $0xb0] sm:$0xff] }
  0xd8   : > { %765 = vmatprep.subr.mxu0 %v434_v55  ;;  %878 = vmatprep.subr.mxu1 %v436_v56  ;;  %v1607_v55 = vld [vmem:[#allocation7 + $0x2b0] sm:$0xff]  ;;  %v1541_v56 = vld [vmem:[#allocation7 + $0xa0] sm:$0xff] }
  0xd9   : > { %766 = vmatpush2.msra.mxu0 %v433_v58  ;;  %879 = vmatpush2.msra.mxu1 %v435_v59  ;;  %v1605_v58 = vld [vmem:[#allocation7 + $0x2a0] sm:$0xff]  ;;  %v1539_v59 = vld [vmem:[#allocation7 + $0x90] sm:$0xff] }
  0xda   : > { %767 = vmatprep.subr.mxu0 %v426_v60  ;;  %880 = vmatprep.subr.mxu1 %v428_v61  ;;  %v1603_v60 = vld [vmem:[#allocation7 + $0x290] sm:$0xff]  ;;  %v1537_v61 = vld [vmem:[#allocation7 + $0x80] sm:$0xff] }
  0xdb   : > { %768 = vmatpush2.msra.mxu0 %v425_v62  ;;  %881 = vmatpush2.msra.mxu1 %v427_v0  ;;  %v1601_v62 = vld [vmem:[#allocation7 + $0x280] sm:$0xff]  ;;  %v1536_v0 = vld [vmem:[#allocation7 + $0x78] sm:$0xff] }
  0xdc   : > { %769 = vmatprep.subr.mxu0 %v418_v3  ;;  %882 = vmatprep.subr.mxu1 %v420_v4  ;;  %v1535_v3 = vld [vmem:[#allocation7 + $0x70] sm:$0xff] }
  0xdd   : > { %770 = vmatpush2.msra.mxu0 %v417_v6  ;;  %883 = vmatpush2.msra.mxu1 %v419_v7  ;;  %v1599_v4 = vld [vmem:[#allocation7 + $0x270] sm:$0xff]  ;;  %v1598_v6 = vld [vmem:[#allocation7 + $0x268] sm:$0xff]  ;;  %v1533_v7 = vld [vmem:[#allocation7 + $0x60] sm:$0xff] }
  0xde   : > { %771 = vmatprep.subr.mxu0 %v410_v8  ;;  %884 = vmatprep.subr.mxu1 %v412_v9  ;;  %v1597_v8 = vld [vmem:[#allocation7 + $0x260] sm:$0xff]  ;;  %v1532_v9 = vld [vmem:[#allocation7 + $0x58] sm:$0xff] }
  0xdf   : > { %772 = vmatpush2.msra.mxu0 %v409_v10  ;;  %885 = vmatpush2.msra.mxu1 %v411_v11  ;;  %v1596_v10 = vld [vmem:[#allocation7 + $0x258] sm:$0xff]  ;;  %v1595_v11 = vld [vmem:[#allocation7 + $0x250] sm:$0xff] }
  0xe0   : > { %773 = vmatprep.subr.mxu0 %v402_v13  ;;  %886 = vmatprep.subr.mxu1 %v404_v15  ;;  %v1530_v13 = vld [vmem:[#allocation7 + $0x48] sm:$0xff] }
  0xe1   : > { %774 = vmatpush2.msra.mxu0 %v401_v18  ;;  %887 = vmatpush2.msra.mxu1 %v403_v19  ;;  %v1594_v15 = vld [vmem:[#allocation7 + $0x248] sm:$0xff]  ;;  %v1529_v18 = vld [vmem:[#allocation7 + $0x40] sm:$0xff] }
  0xe2   : > { %775 = vmatprep.subr.mxu0 %v394_v20  ;;  %888 = vmatprep.subr.mxu1 %v396_v21  ;;  %v1593_v19 = vld [vmem:[#allocation7 + $0x240] sm:$0xff]  ;;  %v1528_v20 = vld [vmem:[#allocation7 + $0x38] sm:$0xff] }
  0xe3   : > { %776 = vmatpush2.msra.mxu0 %v393_v22  ;;  %889 = vmatpush2.msra.mxu1 %v395_v23  ;;  %v1592_v21 = vld [vmem:[#allocation7 + $0x238] sm:$0xff]  ;;  %v1527_v22 = vld [vmem:[#allocation7 + $0x30] sm:$0xff] }
  0xe4   : > { %777 = vmatprep.subr.mxu0 %v386_v25  ;;  %890 = vmatprep.subr.mxu1 %v388_v26  ;;  %v1591_v23 = vld [vmem:[#allocation7 + $0x230] sm:$0xff]  ;;  %v1526_v25 = vld [vmem:[#allocation7 + $0x28] sm:$0xff] }
  0xe5   : > { %778 = vmatpush2.msra.mxu0 %v385_v28  ;;  %891 = vmatpush2.msra.mxu1 %v387_v29  ;;  %v1590_v26 = vld [vmem:[#allocation7 + $0x228] sm:$0xff]  ;;  %v1525_v28 = vld [vmem:[#allocation7 + $0x20] sm:$0xff] }
  0xe6   : > { %779 = vmatprep.subr.mxu0 %v378_v30  ;;  %892 = vmatprep.subr.mxu1 %v380_v31  ;;  %v1589_v29 = vld [vmem:[#allocation7 + $0x220] sm:$0xff]  ;;  %v1524_v30 = vld [vmem:[#allocation7 + $0x18] sm:$0xff] }
  0xe7   : > { %780 = vmatpush2.msra.mxu0 %v377_v32  ;;  %893 = vmatpush2.msra.mxu1 %v379_v33  ;;  %v1588_v31 = vld [vmem:[#allocation7 + $0x218] sm:$0xff]  ;;  %v1523_v32 = vld [vmem:[#allocation7 + $0x10] sm:$0xff] }
  0xe8   : > { %781 = vmatprep.subr.mxu0 %v370_v35  ;;  %894 = vmatprep.subr.mxu1 %v372_v36  ;;  %v1587_v33 = vld [vmem:[#allocation7 + $0x210] sm:$0xff]  ;;  %v1522_v35 = vld [vmem:[#allocation7 + $0x8] sm:$0xff] }
  0xe9   : > { %782 = vmatpush2.msra.mxu0 %v369_v38  ;;  %783 = vmatprep.mubr.f32.mxu0 %v2907_v63  ;;  %v1586_v36 = vld [vmem:[#allocation7 + $0x208] sm:$0xff]  ;;  %v1521_v38 = vld [vmem:[#allocation7] sm:$0xff] }
  0xea   : > { %895 = vmatpush2.msra.mxu1 %v371_v39  ;;  %896 = vmatprep.mubr.f32.mxu1 %v2907_v63  ;;  %v1549_v63 = vld [vmem:[#allocation7 + $0xe0] sm:$0xff] }
  0xeb   : > { %784 = vmatmul.mubr.f32.vlgmr.msra.gmra.mxu0 %v2910_v1  ;;  %897 = vmatmul.mubr.f32.vlgmr.msra.gmra.mxu1 %v2910_v1  ;;  %v1548_v1 = vld [vmem:[#allocation7 + $0xd8] sm:$0xff]  ;;  %v1585_v39 = vld [vmem:[#allocation7 + $0x200] sm:$0xff] }
  0xec   : > { %789 = vmatprep.mubr.f32.mxu0 %v2917_v14  ;;  %902 = vmatprep.mubr.f32.mxu1 %v2917_v14  ;;  %v1612_v14 = vld [vmem:[#allocation7 + $0x2d8] sm:$0xff] }
  0xed   : > { %1777 = vmatprep.subr.mxu0 %v1552_v40  ;;  %1890 = vmatprep.subr.mxu1 %v1616_v41  ;;  %v1584_v40 = vld [vmem:[#allocation7 + $0x1f8] sm:$0xff] }
  0xee   : > { %1778 = vmatpush1.msra.mxu0 %v1551_v42  ;;  %1891 = vmatpush1.msra.mxu1 %v1615_v43  ;;  %v1648_v41 = vld [vmem:[#allocation7 + $0x3f8] sm:$0xff]  ;;  %v1583_v42 = vld [vmem:[#allocation7 + $0x1f0] sm:$0xff] }
  0xef   : > { %790 = vmatmul.mubr.f32.gmra.mxu0 %v2920_v17  ;;  %903 = vmatmul.mubr.f32.gmra.mxu1 %v2920_v17  ;;  %v1546_v17 = vld [vmem:[#allocation7 + $0xc8] sm:$0xff]  ;;  %v1647_v43 = vld [vmem:[#allocation7 + $0x3f0] sm:$0xff] }
  0xf0   : > { %795 = vmatprep.mubr.f32.mxu0 %v2927_v24  ;;  %908 = vmatprep.mubr.f32.mxu1 %v2927_v24  ;;  %v1610_v24 = vld [vmem:[#allocation7 + $0x2c8] sm:$0xff] }
  0xf1   : > { %1779 = vmatprep.subr.mxu0 %v1550_v45  ;;  %1892 = vmatprep.subr.mxu1 %v1614_v46  ;;  %v1582_v45 = vld [vmem:[#allocation7 + $0x1e8] sm:$0xff] }
  0xf2   : > { %1780 = vmatpush1.msra.mxu0 %v1549_v63  ;;  %1893 = vmatpush1.msra.mxu1 %v1613_v48  ;;  %v1646_v46 = vld [vmem:[#allocation7 + $0x3e8] sm:$0xff]  ;;  %v1581_v63 = vld [vmem:[#allocation7 + $0x1e0] sm:$0xff] }
  0xf3   : > { %796 = vmatmul.mubr.f32.gmra.mxu0 %v2930_v27  ;;  %909 = vmatmul.mubr.f32.gmra.mxu1 %v2930_v27  ;;  %v1544_v27 = vld [vmem:[#allocation7 + $0xb8] sm:$0xff]  ;;  %v1645_v48 = vld [vmem:[#allocation7 + $0x3e0] sm:$0xff] }
  0xf4   : > { %801 = vmatprep.mubr.f32.mxu0 %v2937_v34  ;;  %914 = vmatprep.mubr.f32.mxu1 %v2937_v34  ;;  %v1608_v34 = vld [vmem:[#allocation7 + $0x2b8] sm:$0xff] }
  0xf5   : > { %1781 = vmatprep.subr.mxu0 %v1548_v1  ;;  %1894 = vmatprep.subr.mxu1 %v1612_v14  ;;  %v1580_v1 = vld [vmem:[#allocation7 + $0x1d8] sm:$0xff] }
  0xf6   : > { %1782 = vmatpush1.msra.mxu0 %v1547_v49  ;;  %1895 = vmatpush1.msra.mxu1 %v1611_v50  ;;  %v1644_v14 = vld [vmem:[#allocation7 + $0x3d8] sm:$0xff]  ;;  %v1579_v49 = vld [vmem:[#allocation7 + $0x1d0] sm:$0xff] }
  0xf7   : > { %802 = vmatmul.mubr.f32.gmra.mxu0 %v2940_v37  ;;  %915 = vmatmul.mubr.f32.gmra.mxu1 %v2940_v37  ;;  %v1542_v37 = vld [vmem:[#allocation7 + $0xa8] sm:$0xff]  ;;  %v1643_v50 = vld [vmem:[#allocation7 + $0x3d0] sm:$0xff] }
  0xf8   : > { %807 = vmatprep.mubr.f32.mxu0 %v2947_v44  ;;  %920 = vmatprep.mubr.f32.mxu1 %v2947_v44  ;;  %v1606_v44 = vld [vmem:[#allocation7 + $0x2a8] sm:$0xff] }
  0xf9   : > { %1783 = vmatprep.subr.mxu0 %v1546_v17  ;;  %1896 = vmatprep.subr.mxu1 %v1610_v24  ;;  %v1578_v17 = vld [vmem:[#allocation7 + $0x1c8] sm:$0xff] }
  0xfa   : > { %1784 = vmatpush1.msra.mxu0 %v1545_v51  ;;  %1897 = vmatpush1.msra.mxu1 %v1609_v52  ;;  %v1642_v24 = vld [vmem:[#allocation7 + $0x3c8] sm:$0xff]  ;;  %v1577_v51 = vld [vmem:[#allocation7 + $0x1c0] sm:$0xff] }
  0xfb   : > { %808 = vmatmul.mubr.f32.gmra.mxu0 %v2950_v47  ;;  %921 = vmatmul.mubr.f32.gmra.mxu1 %v2950_v47  ;;  %v1540_v47 = vld [vmem:[#allocation7 + $0x98] sm:$0xff]  ;;  %v1641_v52 = vld [vmem:[#allocation7 + $0x3c0] sm:$0xff] }
  0xfc   : > { %813 = vmatprep.mubr.f32.mxu0 %v2957_v54  ;;  %926 = vmatprep.mubr.f32.mxu1 %v2957_v54  ;;  %v1604_v54 = vld [vmem:[#allocation7 + $0x298] sm:$0xff] }
  0xfd   : > { %1785 = vmatprep.subr.mxu0 %v1544_v27  ;;  %1898 = vmatprep.subr.mxu1 %v1608_v34  ;;  %v1576_v27 = vld [vmem:[#allocation7 + $0x1b8] sm:$0xff] }
  0xfe   : > { %1786 = vmatpush1.msra.mxu0 %v1543_v53  ;;  %1899 = vmatpush1.msra.mxu1 %v1607_v55  ;;  %v1640_v34 = vld [vmem:[#allocation7 + $0x3b8] sm:$0xff]  ;;  %v1575_v53 = vld [vmem:[#allocation7 + $0x1b0] sm:$0xff] }
  0xff   : > { %814 = vmatmul.mubr.f32.gmra.mxu0 %v2960_v57  ;;  %927 = vmatmul.mubr.f32.gmra.mxu1 %v2960_v57  ;;  %v1538_v57 = vld [vmem:[#allocation7 + $0x88] sm:$0xff]  ;;  %v1639_v55 = vld [vmem:[#allocation7 + $0x3b0] sm:$0xff] }
 0x100   : > { %819 = vmatprep.mubr.f32.mxu0 %v2967_v2  ;;  %932 = vmatprep.mubr.f32.mxu1 %v2967_v2  ;;  %v1602_v2 = vld [vmem:[#allocation7 + $0x288] sm:$0xff] }
 0x101   : > { %1787 = vmatprep.subr.mxu0 %v1542_v37  ;;  %1900 = vmatprep.subr.mxu1 %v1606_v44  ;;  %v1574_v37 = vld [vmem:[#allocation7 + $0x1a8] sm:$0xff] }
 0x102   : > { %1788 = vmatpush1.msra.mxu0 %v1541_v56  ;;  %1901 = vmatpush1.msra.mxu1 %v1605_v58  ;;  %v1638_v44 = vld [vmem:[#allocation7 + $0x3a8] sm:$0xff]  ;;  %v1573_v56 = vld [vmem:[#allocation7 + $0x1a0] sm:$0xff] }
 0x103   : > { %820 = vmatmul.mubr.f32.gmra.mxu0 %v2970_v5  ;;  %933 = vmatmul.mubr.f32.gmra.mxu1 %v2970_v5  ;;  %v1600_v5 = vld [vmem:[#allocation7 + $0x278] sm:$0xff]  ;;  %v1637_v58 = vld [vmem:[#allocation7 + $0x3a0] sm:$0xff] }
 0x104   : > { %825 = vmatprep.mubr.f32.mxu0 %v2977_v12  ;;  %938 = vmatprep.mubr.f32.mxu1 %v2977_v12  ;;  %v1534_v12 = vld [vmem:[#allocation7 + $0x68] sm:$0xff] }
 0x105   : > { %1789 = vmatprep.subr.mxu0 %v1540_v47  ;;  %1902 = vmatprep.subr.mxu1 %v1604_v54  ;;  %v1572_v47 = vld [vmem:[#allocation7 + $0x198] sm:$0xff] }
 0x106   : > { %1790 = vmatpush1.msra.mxu0 %v1539_v59  ;;  %1903 = vmatpush1.msra.mxu1 %v1603_v60  ;;  %v1636_v54 = vld [vmem:[#allocation7 + $0x398] sm:$0xff]  ;;  %v1571_v59 = vld [vmem:[#allocation7 + $0x190] sm:$0xff] }
 0x107   : > { %826 = vmatmul.mubr.f32.gmra.mxu0 %v2980_v16  ;;  %939 = vmatmul.mubr.f32.gmra.mxu1 %v2980_v16  ;;  %v1531_v16 = vld [vmem:[#allocation7 + $0x50] sm:$0xff] }
 0x108   : > { %1791 = vmatprep.subr.mxu0 %v1538_v57  ;;  %1904 = vmatprep.subr.mxu1 %v1602_v2  ;;  %v1635_v60 = vld [vmem:[#allocation7 + $0x390] sm:$0xff]  ;;  %v1570_v57 = vld [vmem:[#allocation7 + $0x188] sm:$0xff] }
 0x109   : > { %1792 = vmatpush1.msra.mxu0 %v1537_v61  ;;  %1905 = vmatpush1.msra.mxu1 %v1601_v62  ;;  %v1634_v2 = vld [vmem:[#allocation7 + $0x388] sm:$0xff]  ;;  %v1569_v61 = vld [vmem:[#allocation7 + $0x180] sm:$0xff] }
 0x10a   : > { %1793 = vmatprep.subr.mxu0 %v1536_v0  ;;  %1906 = vmatprep.subr.mxu1 %v1600_v5  ;;  %v1633_v62 = vld [vmem:[#allocation7 + $0x380] sm:$0xff]  ;;  %v1568_v0 = vld [vmem:[#allocation7 + $0x178] sm:$0xff] }
 0x10b   : > { %1794 = vmatpush1.msra.mxu0 %v1535_v3  ;;  %1907 = vmatpush1.msra.mxu1 %v1599_v4  ;;  %v1632_v5 = vld [vmem:[#allocation7 + $0x378] sm:$0xff]  ;;  %v1567_v3 = vld [vmem:[#allocation7 + $0x170] sm:$0xff] }
 0x10c   : > { %1795 = vmatprep.subr.mxu0 %v1534_v12  ;;  %1908 = vmatprep.subr.mxu1 %v1598_v6  ;;  %v1631_v4 = vld [vmem:[#allocation7 + $0x370] sm:$0xff]  ;;  %v1566_v12 = vld [vmem:[#allocation7 + $0x168] sm:$0xff] }
 0x10d   : > { %1796 = vmatpush1.msra.mxu0 %v1533_v7  ;;  %1909 = vmatpush1.msra.mxu1 %v1597_v8  ;;  %v1630_v6 = vld [vmem:[#allocation7 + $0x368] sm:$0xff]  ;;  %v1565_v7 = vld [vmem:[#allocation7 + $0x160] sm:$0xff] }
 0x10e   : > { %1797 = vmatprep.subr.mxu0 %v1532_v9  ;;  %1910 = vmatprep.subr.mxu1 %v1596_v10  ;;  %v1629_v8 = vld [vmem:[#allocation7 + $0x360] sm:$0xff]  ;;  %v1564_v9 = vld [vmem:[#allocation7 + $0x158] sm:$0xff] }
 0x10f   : > { %1798 = vmatpush1.msra.mxu0 %v1531_v16  ;;  %1911 = vmatpush1.msra.mxu1 %v1595_v11  ;;  %v1628_v10 = vld [vmem:[#allocation7 + $0x358] sm:$0xff]  ;;  %v1563_v16 = vld [vmem:[#allocation7 + $0x150] sm:$0xff] }
 0x110   : > { %1799 = vmatprep.subr.mxu0 %v1530_v13  ;;  %1912 = vmatprep.subr.mxu1 %v1594_v15  ;;  %v1627_v11 = vld [vmem:[#allocation7 + $0x350] sm:$0xff]  ;;  %v1562_v13 = vld [vmem:[#allocation7 + $0x148] sm:$0xff] }
 0x111   : > { %1800 = vmatpush1.msra.mxu0 %v1529_v18  ;;  %1913 = vmatpush1.msra.mxu1 %v1593_v19  ;;  %v1626_v15 = vld [vmem:[#allocation7 + $0x348] sm:$0xff]  ;;  %v1561_v18 = vld [vmem:[#allocation7 + $0x140] sm:$0xff] }
 0x112   : > { %1801 = vmatprep.subr.mxu0 %v1528_v20  ;;  %1914 = vmatprep.subr.mxu1 %v1592_v21  ;;  %v1625_v19 = vld [vmem:[#allocation7 + $0x340] sm:$0xff]  ;;  %v1560_v20 = vld [vmem:[#allocation7 + $0x138] sm:$0xff] }
 0x113   : > { %1802 = vmatpush1.msra.mxu0 %v1527_v22  ;;  %1915 = vmatpush1.msra.mxu1 %v1591_v23  ;;  %v1624_v21 = vld [vmem:[#allocation7 + $0x338] sm:$0xff]  ;;  %v1559_v22 = vld [vmem:[#allocation7 + $0x130] sm:$0xff] }
 0x114   : > { %1803 = vmatprep.subr.mxu0 %v1526_v25  ;;  %1916 = vmatprep.subr.mxu1 %v1590_v26  ;;  %v1623_v23 = vld [vmem:[#allocation7 + $0x330] sm:$0xff]  ;;  %v1558_v25 = vld [vmem:[#allocation7 + $0x128] sm:$0xff] }
 0x115   : > { %1804 = vmatpush1.msra.mxu0 %v1525_v28  ;;  %1917 = vmatpush1.msra.mxu1 %v1589_v29  ;;  %v1622_v26 = vld [vmem:[#allocation7 + $0x328] sm:$0xff]  ;;  %v1557_v28 = vld [vmem:[#allocation7 + $0x120] sm:$0xff] }
 0x116   : > { %1805 = vmatprep.subr.mxu0 %v1524_v30  ;;  %1918 = vmatprep.subr.mxu1 %v1588_v31  ;;  %v1621_v29 = vld [vmem:[#allocation7 + $0x320] sm:$0xff]  ;;  %v1556_v30 = vld [vmem:[#allocation7 + $0x118] sm:$0xff] }
 0x117   : > { %1806 = vmatpush1.msra.mxu0 %v1523_v32  ;;  %1919 = vmatpush1.msra.mxu1 %v1587_v33  ;;  %v1620_v31 = vld [vmem:[#allocation7 + $0x318] sm:$0xff]  ;;  %v1555_v32 = vld [vmem:[#allocation7 + $0x110] sm:$0xff] }
 0x118   : > { %1807 = vmatprep.subr.mxu0 %v1522_v35  ;;  %1920 = vmatprep.subr.mxu1 %v1586_v36  ;;  %v1619_v33 = vld [vmem:[#allocation7 + $0x310] sm:$0xff]  ;;  %v1554_v35 = vld [vmem:[#allocation7 + $0x108] sm:$0xff] }
 0x119   : > { %1808 = vmatpush1.msra.mxu0 %v1521_v38  ;;  %1921 = vmatpush1.msra.mxu1 %v1585_v39  ;;  %v1618_v36 = vld [vmem:[#allocation7 + $0x308] sm:$0xff]  ;;  %v1553_v38 = vld [vmem:[#allocation7 + $0x100] sm:$0xff] }
 0x11a   : > { %1809 = vmatprep.subr.mxu0 %v1584_v40  ;;  %1922 = vmatprep.subr.mxu1 %v1648_v41  ;;  %v1617_v39 = vld [vmem:[#allocation7 + $0x300] sm:$0xff]  ;;  %v1680_v40 = vld [vmem:[#allocation7 + $0x4f8] sm:$0xff] }
 0x11b   : > { %1810 = vmatpush2.msra.mxu0 %v1583_v42  ;;  %1923 = vmatpush2.msra.mxu1 %v1647_v43  ;;  %v1744_v41 = vld [vmem:[#allocation7 + $0x6f8] sm:$0xff] }
 0x11c   : > { %1811 = vmatprep.subr.mxu0 %v1582_v45  ;;  %1924 = vmatprep.subr.mxu1 %v1646_v46 }
 0x11d   : > { %1812 = vmatpush2.msra.mxu0 %v1581_v63  ;;  %1925 = vmatpush2.msra.mxu1 %v1645_v48 }
 0x11e   : > { %1813 = vmatprep.subr.mxu0 %v1580_v1  ;;  %1926 = vmatprep.subr.mxu1 %v1644_v14 }
 0x11f   : > { %1814 = vmatpush2.msra.mxu0 %v1579_v49  ;;  %1927 = vmatpush2.msra.mxu1 %v1643_v50 }
 0x120   : > { %1815 = vmatprep.subr.mxu0 %v1578_v17  ;;  %1928 = vmatprep.subr.mxu1 %v1642_v24 }
 0x121   : > { %1816 = vmatpush2.msra.mxu0 %v1577_v51  ;;  %1929 = vmatpush2.msra.mxu1 %v1641_v52 }
 0x122   : > { %1817 = vmatprep.subr.mxu0 %v1576_v27  ;;  %1930 = vmatprep.subr.mxu1 %v1640_v34 }
 0x123   : > { %1818 = vmatpush2.msra.mxu0 %v1575_v53  ;;  %1931 = vmatpush2.msra.mxu1 %v1639_v55 }
 0x124   : > { %1819 = vmatprep.subr.mxu0 %v1574_v37  ;;  %1932 = vmatprep.subr.mxu1 %v1638_v44 }
 0x125   : > { %1820 = vmatpush2.msra.mxu0 %v1573_v56  ;;  %1933 = vmatpush2.msra.mxu1 %v1637_v58 }
 0x126   : > { %1821 = vmatprep.subr.mxu0 %v1572_v47  ;;  %1934 = vmatprep.subr.mxu1 %v1636_v54 }
 0x127   : > { %1822 = vmatpush2.msra.mxu0 %v1571_v59  ;;  %1935 = vmatpush2.msra.mxu1 %v1635_v60 }
 0x128   : > { %1823 = vmatprep.subr.mxu0 %v1570_v57  ;;  %1936 = vmatprep.subr.mxu1 %v1634_v2 }
 0x129   : > { %1824 = vmatpush2.msra.mxu0 %v1569_v61  ;;  %1937 = vmatpush2.msra.mxu1 %v1633_v62 }
 0x12a   : > { %1825 = vmatprep.subr.mxu0 %v1568_v0  ;;  %1938 = vmatprep.subr.mxu1 %v1632_v5 }
 0x12b   : > { %1826 = vmatpush2.msra.mxu0 %v1567_v3  ;;  %1939 = vmatpush2.msra.mxu1 %v1631_v4 }
 0x12c   : > { %1827 = vmatprep.subr.mxu0 %v1566_v12  ;;  %1940 = vmatprep.subr.mxu1 %v1630_v6 }
 0x12d   : > { %1828 = vmatpush2.msra.mxu0 %v1565_v7  ;;  %1941 = vmatpush2.msra.mxu1 %v1629_v8 }
 0x12e   : > { %1829 = vmatprep.subr.mxu0 %v1564_v9  ;;  %1942 = vmatprep.subr.mxu1 %v1628_v10 }
 0x12f   : > { %1830 = vmatpush2.msra.mxu0 %v1563_v16  ;;  %1943 = vmatpush2.msra.mxu1 %v1627_v11 }
 0x130   : > { %1831 = vmatprep.subr.mxu0 %v1562_v13  ;;  %1944 = vmatprep.subr.mxu1 %v1626_v15 }
 0x131   : > { %1832 = vmatpush2.msra.mxu0 %v1561_v18  ;;  %1945 = vmatpush2.msra.mxu1 %v1625_v19 }
 0x132   : > { %1833 = vmatprep.subr.mxu0 %v1560_v20  ;;  %1946 = vmatprep.subr.mxu1 %v1624_v21 }
 0x133   : > { %1834 = vmatpush2.msra.mxu0 %v1559_v22  ;;  %1947 = vmatpush2.msra.mxu1 %v1623_v23 }
 0x134   : > { %1835 = vmatprep.subr.mxu0 %v1558_v25  ;;  %1948 = vmatprep.subr.mxu1 %v1622_v26 }
 0x135   : > { %1836 = vmatpush2.msra.mxu0 %v1557_v28  ;;  %1949 = vmatpush2.msra.mxu1 %v1621_v29 }
 0x136   : > { %1837 = vmatprep.subr.mxu0 %v1556_v30  ;;  %1950 = vmatprep.subr.mxu1 %v1620_v31 }
 0x137   : > { %1838 = vmatpush2.msra.mxu0 %v1555_v32  ;;  %1951 = vmatpush2.msra.mxu1 %v1619_v33 }
 0x138   : > { %1839 = vmatprep.subr.mxu0 %v1554_v35  ;;  %1952 = vmatprep.subr.mxu1 %v1618_v36 }
 0x139   : > { %1840 = vmatpush2.msra.mxu0 %v1553_v38  ;;  %1953 = vmatpush2.msra.mxu1 %v1617_v39 }
 0x13a   : > { %2003 = vmatprep.subr.mxu0 %v1680_v40  ;;  %2116 = vmatprep.subr.mxu1 %v1744_v41 }
 0x15b   : > { %v559_v42 = vpop.f32.mrf.mxu0  ;;  %v672_v43 = vpop.f32.mrf.mxu1 }
 0x15c   : > { %v1009_v45 = vmul.f32 0.044715, %v559_v42  ;;  %v1011_v46 = vmul.f32 0.044715, %v672_v43  ;;  %v945_v32 = vmul.f32 0.5, %v559_v42  ;;  %v947_v33 = vmul.f32 0.5, %v672_v43 }
 0x15d   : > { %v3018_v63 = vpop.f32.mrf.mxu0  ;;  %v3020_v48 = vpop.f32.mrf.mxu1 }
 0x15e   : > { %v1073_v1 = vmul.f32 %v1009_v45, %v559_v42  ;;  %v1075_v14 = vmul.f32 %v1011_v46, %v672_v43  ;;  %v1010_v49 = vmul.f32 0.044715, %v3018_v63  ;;  %v1012_v50 = vmul.f32 0.044715, %v3020_v48 }
 0x15f   : > { %v946_v41 = vmul.f32 0.5, %v3018_v63  ;;  %v948_v45 = vmul.f32 0.5, %v3020_v48 }
 0x160   : > { %v1137_v17 = vmul.f32 %v1073_v1, %v559_v42  ;;  %v1139_v24 = vmul.f32 %v1075_v14, %v672_v43  ;;  %v1074_v51 = vmul.f32 %v1010_v49, %v3018_v63  ;;  %v1076_v52 = vmul.f32 %v1012_v50, %v3020_v48 }
 0x162   : > { %v1201_v27 = vadd.f32 %v1137_v17, %v559_v42  ;;  %v1203_v34 = vadd.f32 %v1139_v24, %v672_v43  ;;  %v1138_v53 = vmul.f32 %v1074_v51, %v3018_v63  ;;  %v1140_v55 = vmul.f32 %v1076_v52, %v3020_v48 }
 0x164   : > { %v1265_v37 = vmul.f32 0.7978846, %v1201_v27  ;;  %v1202_v44 = vadd.f32 %v1138_v53, %v3018_v63  ;;  %v1204_v56 = vadd.f32 %v1140_v55, %v3020_v48  ;;  %v565_v58 = vpop.f32.mrf.mxu0  ;;  %v678_v47 = vpop.f32.mrf.mxu1  ;;  %v1267_v59 = vmul.f32 0.7978846, %v1203_v34 }
 0x165   : > { %v1017_v54 = vmul.f32 0.044715, %v565_v58  ;;  %v1019_v8 = vmul.f32 0.044715, %v678_v47  ;;  %v3051_v49 = vmul.f32 0.5, %v565_v58  ;;  %v3053_v50 = vmul.f32 0.5, %v678_v47 }
 0x166   : > { %v1266_v60 = vmul.f32 0.7978846, %v1202_v44  ;;  %v567_v57 = vpop.f32.mrf.mxu0  ;;  %v680_v2 = vpop.f32.mrf.mxu1  ;;  %2449 = vtanh.f32 %v1265_v37  ;;  %v1268_v61 = vmul.f32 0.7978846, %v1204_v56 }
 0x167   : > { %v1081_v62 = vmul.f32 %v1017_v54, %v565_v58  ;;  %v1018_v0 = vmul.f32 0.044715, %v567_v57  ;;  %v1020_v5 = vmul.f32 0.044715, %v680_v2  ;;  %v1083_v20 = vmul.f32 %v1019_v8, %v678_v47 }
 0x168   : > { %2451 = vtanh.f32 %v1266_v60  ;;  %v3061_v51 = vmul.f32 0.5, %v567_v57  ;;  %v3063_v63 = vmul.f32 0.5, %v680_v2 }
 0x169   : > { %v1082_v3 = vmul.f32 %v1018_v0, %v567_v57  ;;  %2453 = vtanh.f32 %v1267_v59  ;;  %v1084_v4 = vmul.f32 %v1020_v5, %v680_v2  ;;  %v1145_v7 = vmul.f32 %v1081_v62, %v565_v58 }
 0x16a   : > { %v571_v12 = vpop.f32.mrf.mxu0  ;;  %v3030_v6 = vpop.f32.mrf.mxu1  ;;  %2455 = vtanh.f32 %v1268_v61  ;;  %v1147_v36 = vmul.f32 %v1083_v20, %v678_v47 }
 0x16b   : > { %v1146_v9 = vmul.f32 %v1082_v3, %v567_v57  ;;  %v1148_v10 = vmul.f32 %v1084_v4, %v680_v2  ;;  %v1025_v15 = vmul.f32 0.044715, %v571_v12  ;;  %v1209_v19 = vadd.f32 %v1145_v7, %v565_v58 }
 0x16c   : > { %v3032_v16 = vpop.f32.mrf.mxu0  ;;  %v3034_v11 = vpop.f32.mrf.mxu1  ;;  %v1027_v23 = vmul.f32 0.044715, %v3030_v6  ;;  %v1211_v52 = vadd.f32 %v1147_v36, %v678_v47  ;;  %v3066_v34 = vmul.f32 0.5, %v571_v12 }
 0x16d   : > { %v1210_v13 = vadd.f32 %v1146_v9, %v567_v57  ;;  %v1212_v18 = vadd.f32 %v1148_v10, %v680_v2  ;;  %v1089_v28 = vmul.f32 %v1025_v15, %v571_v12  ;;  %v1026_v29 = vmul.f32 0.044715, %v3032_v16 }
 0x16e   : > { %v1273_v35 = vmul.f32 0.7978846, %v1209_v19  ;;  %v1091_v39 = vmul.f32 %v1027_v23, %v3030_v6  ;;  %v1028_v40 = vmul.f32 0.044715, %v3034_v11  ;;  %v3077_v57 = vmul.f32 0.5, %v3030_v6  ;;  %v1678_v23 = vld [vmem:[#allocation7 + $0x4e8] sm:$0xff] }
 0x16f   : > { %v1274_v21 = vmul.f32 0.7978846, %v1210_v13  ;;  %v1276_v22 = vmul.f32 0.7978846, %v1212_v18  ;;  %v1153_v1 = vmul.f32 %v1089_v28, %v571_v12  ;;  %v1090_v42 = vmul.f32 %v1026_v29, %v3032_v16  ;;  %v1679_v18 = vld [vmem:[#allocation7 + $0x4f0] sm:$0xff] }
 0x170   : > { %v3037_v25 = vpop.f32.mrf.mxu0  ;;  %v3039_v26 = vpop.f32.mrf.mxu1  ;;  %v1155_v37 = vmul.f32 %v1091_v39, %v3030_v6  ;;  %v1092_v44 = vmul.f32 %v1028_v40, %v3034_v11  ;;  %v3094_v29 = vmul.f32 0.7978846, %v1211_v52  ;;  %v1743_v39 = vld [vmem:[#allocation7 + $0x6f0] sm:$0xff]  ;;  %v1677_v40 = vld [vmem:[#allocation7 + $0x4e0] sm:$0xff] }
 0x171   : > { %2457 = vtanh.f32 %v1274_v21  ;;  %v1033_v14 = vmul.f32 0.044715, %v3037_v25  ;;  %v1035_v43 = vmul.f32 0.044715, %v3039_v26  ;;  %v1217_v59 = vadd.f32 %v1153_v1, %v571_v12  ;;  %v1742_v1 = vld [vmem:[#allocation7 + $0x6e8] sm:$0xff] }
 0x172   : > { %v3042_v30 = vpop.f32.mrf.mxu0  ;;  %v3044_v31 = vpop.f32.mrf.mxu1  ;;  %2459 = vtanh.f32 %v1276_v22  ;;  %v1154_v61 = vmul.f32 %v1090_v42, %v3032_v16  ;;  %v1219_v8 = vadd.f32 %v1155_v37, %v3030_v6  ;;  %v1156_v9 = vmul.f32 %v1092_v44, %v3034_v11 }
 0x173   : > { %v2450_v38 = vpop.eup %2449  ;;  %v1034_v27 = vmul.f32 0.044715, %v3042_v30  ;;  %2461 = vtanh.f32 %v1273_v35  ;;  %v1097_v60 = vmul.f32 %v1033_v14, %v3037_v25  ;;  %v1036_v47 = vmul.f32 0.044715, %v3044_v31  ;;  %v1676_v14 = vld [vmem:[#allocation7 + $0x4d8] sm:$0xff] }
 0x174   : > { %v1393_v55 = vadd.f32 1.0, %v2450_v38  ;;  %v1099_v62 = vmul.f32 %v1035_v43, %v3039_v26  ;;  %v3106_v42 = vmul.f32 0.5, %v3032_v16  ;;  %v3108_v43 = vmul.f32 0.7978846, %v1217_v59  ;;  %v1740_v59 = vld [vmem:[#allocation7 + $0x6d8] sm:$0xff] }
 0x175   : > { %v2452_v46 = vpop.eup %2451  ;;  %v1098_v5 = vmul.f32 %v1034_v27, %v3042_v30  ;;  %v1161_v19 = vmul.f32 %v1097_v60, %v3037_v25  ;;  %v1100_v20 = vmul.f32 %v1036_v47, %v3044_v31  ;;  %v1220_v52 = vadd.f32 %v1156_v9, %v3034_v11  ;;  %v1674_v60 = vld [vmem:[#allocation7 + $0x4c8] sm:$0xff] }
 0x176   : > { %v3057_v17 = vpop.f32.mrf.mxu0  ;;  %v3059_v24 = vpop.f32.mrf.mxu1  ;;  %v1394_v54 = vadd.f32 1.0, %v2452_v46  ;;  %v1457_v7 = vmul.f32 %v1393_v55, %v945_v32  ;;  %v1163_v32 = vmul.f32 %v1099_v62, %v3039_v26  ;;  %v1218_v46 = vadd.f32 %v1154_v61, %v3032_v16  ;;  %v1675_v55 = vld [vmem:[#allocation7 + $0x4d0] sm:$0xff] }
 0x177   : > { %v2454_v48 = vpop.eup %2453  ;;  %v1041_v0 = vmul.f32 0.044715, %v3057_v17  ;;  %v1043_v3 = vmul.f32 0.044715, %v3059_v24  ;;  %v1225_v37 = vadd.f32 %v1161_v19, %v3037_v25  ;;  %v1164_v44 = vmul.f32 %v1100_v20, %v3044_v31 }
 0x178   : > { %v2456_v53 = vpop.eup %2455  ;;  %v3070_v56 = vpop.f32.mrf.mxu0  ;;  %v1395_v2 = vadd.f32 1.0, %v2454_v48  ;;  %v1458_v4 = vmul.f32 %v1394_v54, %v946_v41  ;;  %v3110_v48 = vmul.f32 0.7978846, %v1219_v8  ;;  %v1227_v47 = vadd.f32 %v1163_v32, %v3039_v26  ;;  %v1672_v32 = vld [vmem:[#allocation7 + $0x4b8] sm:$0xff] }
 0x179   : > { %v3072_v58 = vpop.f32.mrf.mxu1  ;;  %v1396_v12 = vadd.f32 1.0, %v2456_v53  ;;  %v1042_v10 = vmul.f32 0.044715, %v3070_v56  ;;  %v1105_v35 = vmul.f32 %v1041_v0, %v3057_v17  ;;  %v1741_v53 = vld [vmem:[#allocation7 + $0x6e0] sm:$0xff]  ;;  %v1739_v0 = vld [vmem:[#allocation7 + $0x6d0] sm:$0xff]  ;;  %2463 = vtanh.f32 %v3094_v29  ;;  %v1732_v29 = vld [vmem:[#allocation7 + $0x698] sm:$0xff] }
 0x17a   : > { %v1044_v21 = vmul.f32 0.044715, %v3072_v58  ;;  %1841 = vmatprep.mubr.f32.mxu0 %v1458_v4  ;;  %v1459_v6 = vmul.f32 %v1395_v2, %v947_v33  ;;  %v1107_v33 = vmul.f32 %v1043_v3, %v3059_v24  ;;  %v1673_v4 = vld [vmem:[#allocation7 + $0x4c0] sm:$0xff] }
 0x17b   : > { %v1460_v22 = vmul.f32 %v1396_v12, %v948_v45  ;;  %1842 = vmatmul.mubr.f32.vlgmr.msra.gmra.mxu0 %v1457_v7  ;;  %v1162_v45 = vmul.f32 %v1098_v5, %v3042_v30  ;;  %v1106_v27 = vmul.f32 %v1042_v10, %v3070_v56  ;;  %v1169_v2 = vmul.f32 %v1105_v35, %v3057_v17  ;;  %v1738_v10 = vld [vmem:[#allocation7 + $0x6c8] sm:$0xff]  ;;  %v1736_v35 = vld [vmem:[#allocation7 + $0x6b8] sm:$0xff] }
 0x17c   : > { %v3087_v13 = vpop.f32.mrf.mxu0  ;;  %v3089_v15 = vpop.f32.mrf.mxu1  ;;  %2004 = vmatpush1.msra.mxu0 %v1679_v18  ;;  %v1108_v54 = vmul.f32 %v1044_v21, %v3072_v58  ;;  %v3124_v12 = vmul.f32 0.7978846, %v1218_v46  ;;  %v1171_v8 = vmul.f32 %v1107_v33, %v3059_v24  ;;  %v1735_v33 = vld [vmem:[#allocation7 + $0x6b0] sm:$0xff] }
 0x17d   : > { %1954 = vmatprep.mubr.f32.mxu1 %v1460_v22  ;;  %2005 = vmatprep.subr.mxu0 %v1678_v23  ;;  %v1049_v16 = vmul.f32 0.044715, %v3087_v13  ;;  %v1226_v7 = vadd.f32 %v1162_v45, %v3042_v30  ;;  %v1051_v9 = vmul.f32 0.044715, %v3089_v15  ;;  %v1170_v19 = vmul.f32 %v1106_v27, %v3070_v56  ;;  %v1671_v45 = vld [vmem:[#allocation7 + $0x4b0] sm:$0xff] }
 0x17e   : > { %v2458_v28 = vpop.eup %2457  ;;  %v3098_v36 = vpop.f32.mrf.mxu0  ;;  %1955 = vmatmul.mubr.f32.vlgmr.msra.gmra.mxu1 %v1459_v6  ;;  %2006 = vmatpush1.msra.mxu0 %v1677_v40  ;;  %v1737_v6 = vld [vmem:[#allocation7 + $0x6c0] sm:$0xff]  ;;  %v1228_v40 = vadd.f32 %v1164_v44, %v3044_v31  ;;  %v1235_v27 = vadd.f32 %v1171_v8, %v3059_v24  ;;  %v1734_v44 = vld [vmem:[#allocation7 + $0x6a8] sm:$0xff]  ;;  %2465 = vtanh.f32 %v3124_v12 }
 0x17f   : > { %v3100_v38 = vpop.f32.mrf.mxu1  ;;  %v2460_v41 = vpop.eup %2459  ;;  %2117 = vmatpush1.msra.mxu1 %v1743_v39  ;;  %2007 = vmatprep.subr.mxu0 %v1676_v14  ;;  %v1402_v5 = vadd.f32 1.0, %v2458_v28  ;;  %v1050_v20 = vmul.f32 0.044715, %v3098_v36  ;;  %v3137_v39 = vmul.f32 0.7978846, %v1220_v52  ;;  %v1113_v46 = vmul.f32 %v1049_v16, %v3087_v13 }
 0x180   : > { %2118 = vmatprep.subr.mxu1 %v1742_v1  ;;  %v1404_v3 = vadd.f32 1.0, %v2460_v41  ;;  %2008 = vmatpush1.msra.mxu0 %v1675_v55  ;;  %v2462_v18 = vpop.eup %2461  ;;  %v1172_v41 = vmul.f32 %v1108_v54, %v3072_v58  ;;  %v1670_v1 = vld [vmem:[#allocation7 + $0x4a8] sm:$0xff]  ;;  %v1233_v14 = vadd.f32 %v1169_v2, %v3057_v17  ;;  %v1052_v52 = vmul.f32 0.044715, %v3100_v38  ;;  %v1733_v54 = vld [vmem:[#allocation7 + $0x6a0] sm:$0xff] }
 0x181   : > { %2119 = vmatpush1.msra.mxu1 %v1741_v53  ;;  %v1466_v23 = vmul.f32 %v1402_v5, %v3061_v51  ;;  %2009 = vmatprep.subr.mxu0 %v1674_v60  ;;  %v3142_v51 = vmul.f32 0.7978846, %v1225_v37  ;;  %v1115_v53 = vmul.f32 %v1051_v9, %v3089_v15  ;;  %v1401_v55 = vadd.f32 1.0, %v2462_v18  ;;  %v1669_v37 = vld [vmem:[#allocation7 + $0x4a0] sm:$0xff]  ;;  %v1668_v5 = vld [vmem:[#allocation7 + $0x498] sm:$0xff]  ;;  %v1667_v9 = vld [vmem:[#allocation7 + $0x490] sm:$0xff] }
 0x182   : > { %v3120_v61 = vpop.f32.mrf.mxu0  ;;  %v3122_v62 = vpop.f32.mrf.mxu1  ;;  %2120 = vmatprep.subr.mxu1 %v1740_v59  ;;  %v1468_v28 = vmul.f32 %v1404_v3, %v3063_v63  ;;  %2010 = vmatpush1.msra.mxu0 %v1673_v4  ;;  %v3144_v63 = vmul.f32 0.7978846, %v1227_v47  ;;  %v3151_v16 = vmul.f32 0.7978846, %v1226_v7  ;;  %v1234_v59 = vadd.f32 %v1170_v19, %v3070_v56  ;;  %v1666_v18 = vld [vmem:[#allocation7 + $0x488] sm:$0xff] }
 0x183   : > { %2121 = vmatpush1.msra.mxu1 %v1739_v0  ;;  %1847 = vmatprep.mubr.f32.mxu0 %v1466_v23  ;;  %v1114_v60 = vmul.f32 %v1050_v20, %v3098_v36  ;;  %v3160_v3 = vmul.f32 0.7978846, %v1228_v40  ;;  %v1236_v4 = vadd.f32 %v1172_v41, %v3072_v58  ;;  %v1177_v7 = vmul.f32 %v1113_v46, %v3087_v13 }
 0x184   : > { %v3131_v21 = vpop.f32.mrf.mxu0  ;;  %v3133_v22 = vpop.f32.mrf.mxu1  ;;  %1960 = vmatprep.mubr.f32.mxu1 %v1468_v28  ;;  %2122 = vmatprep.subr.mxu1 %v1738_v10  ;;  %v1465_v8 = vmul.f32 %v1401_v55, %v3051_v49  ;;  %v1731_v10 = vld [vmem:[#allocation7 + $0x690] sm:$0xff]  ;;  %v3165_v19 = vmul.f32 0.7978846, %v1233_v14  ;;  %v1116_v20 = vmul.f32 %v1052_v52, %v3100_v38  ;;  %v3172_v49 = vmul.f32 0.7978846, %v1235_v27  ;;  %v1729_v14 = vld [vmem:[#allocation7 + $0x680] sm:$0xff] }
 0x185   : > { %2011 = vmatprep.subr.mxu0 %v1672_v32  ;;  %v1058_v47 = vmul.f32 0.044715, %v3131_v21  ;;  %2123 = vmatpush1.msra.mxu1 %v1737_v6  ;;  %v1060_v23 = vmul.f32 0.044715, %v3133_v22  ;;  %v1730_v6 = vld [vmem:[#allocation7 + $0x688] sm:$0xff]  ;;  %v1665_v32 = vld [vmem:[#allocation7 + $0x480] sm:$0xff]  ;;  %2467 = vtanh.f32 %v3137_v39 }
 0x186   : > { %2012 = vmatpush1.msra.mxu0 %v1671_v45  ;;  %2124 = vmatprep.subr.mxu1 %v1736_v35  ;;  %v1179_v35 = vmul.f32 %v1115_v53, %v3089_v15  ;;  %v1057_v40 = vmul.f32 0.044715, %v3120_v61  ;;  %v1059_v41 = vmul.f32 0.044715, %v3122_v62  ;;  %v3179_v45 = vmul.f32 0.7978846, %v1234_v59 }
 0x187   : > { %2013 = vmatprep.subr.mxu0 %v1670_v1  ;;  %2125 = vmatpush1.msra.mxu1 %v1735_v33  ;;  %v1178_v33 = vmul.f32 %v1114_v60, %v3098_v36  ;;  %v1122_v12 = vmul.f32 %v1058_v47, %v3131_v21  ;;  %v1664_v52 = vld [vmem:[#allocation7 + $0x478] sm:$0xff]  ;;  %v3184_v27 = vmul.f32 0.7978846, %v1236_v4  ;;  %v1241_v53 = vadd.f32 %v1177_v7, %v3087_v13  ;;  %v1663_v47 = vld [vmem:[#allocation7 + $0x470] sm:$0xff] }
 0x188   : > { %v3156_v2 = vpop.f32.mrf.mxu0  ;;  %v3158_v0 = vpop.f32.mrf.mxu1  ;;  %2014 = vmatpush1.msra.mxu0 %v1669_v37  ;;  %2126 = vmatprep.subr.mxu1 %v1734_v44  ;;  %v1180_v37 = vmul.f32 %v1116_v20, %v3100_v38  ;;  %v1124_v59 = vmul.f32 %v1060_v23, %v3133_v22  ;;  %v1121_v4 = vmul.f32 %v1057_v40, %v3120_v61  ;;  %2469 = vtanh.f32 %v3108_v43  ;;  %v1661_v20 = vld [vmem:[#allocation7 + $0x460] sm:$0xff] }
 0x189   : > { %1848 = vmatmul.mubr.f32.gmra.mxu0 %v1465_v8  ;;  %v1065_v1 = vmul.f32 0.044715, %v3156_v2  ;;  %2127 = vmatpush1.msra.mxu1 %v1733_v54  ;;  %v1067_v55 = vmul.f32 0.044715, %v3158_v0  ;;  %v1728_v54 = vld [vmem:[#allocation7 + $0x678] sm:$0xff]  ;;  %v1123_v7 = vmul.f32 %v1059_v41, %v3122_v62  ;;  %v1662_v8 = vld [vmem:[#allocation7 + $0x468] sm:$0xff]  ;;  %v1186_v39 = vmul.f32 %v1122_v12, %v3131_v21 }
 0x18a   : > { %v3169_v28 = vpop.f32.mrf.mxu0  ;;  %v3177_v46 = vpop.f32.mrf.mxu1  ;;  %2015 = vmatprep.subr.mxu0 %v1668_v5  ;;  %2128 = vmatprep.subr.mxu1 %v1732_v29  ;;  %v1243_v5 = vadd.f32 %v1179_v35, %v3089_v15  ;;  %v1727_v29 = vld [vmem:[#allocation7 + $0x670] sm:$0xff]  ;;  %2471 = vtanh.f32 %v3110_v48  ;;  %v3201_v23 = vmul.f32 0.7978846, %v1241_v53  ;;  %v1660_v35 = vld [vmem:[#allocation7 + $0x458] sm:$0xff]  ;;  %v1244_v40 = vadd.f32 %v1180_v37, %v3100_v38  ;;  %v1658_v53 = vld [vmem:[#allocation7 + $0x448] sm:$0xff] }
 0x18b   : > { %v1066_v44 = vmul.f32 0.044715, %v3169_v28  ;;  %2016 = vmatpush1.msra.mxu0 %v1667_v9  ;;  %v1068_v60 = vmul.f32 0.044715, %v3177_v46  ;;  %2129 = vmatpush1.msra.mxu1 %v1731_v10  ;;  %v1242_v9 = vadd.f32 %v1178_v33, %v3098_v36  ;;  %v1129_v10 = vmul.f32 %v1065_v1, %v3156_v2  ;;  %v1724_v33 = vld [vmem:[#allocation7 + $0x658] sm:$0xff]  ;;  %v1659_v12 = vld [vmem:[#allocation7 + $0x450] sm:$0xff] }
 0x18c   : > { %2017 = vmatprep.subr.mxu0 %v1666_v18  ;;  %2130 = vmatprep.subr.mxu1 %v1730_v6  ;;  %v1726_v18 = vld [vmem:[#allocation7 + $0x668] sm:$0xff]  ;;  %v1131_v43 = vmul.f32 %v1067_v55, %v3158_v0  ;;  %2473 = vtanh.f32 %v3151_v16  ;;  %v1188_v48 = vmul.f32 %v1124_v59, %v3133_v22  ;;  %v3210_v1 = vmul.f32 0.7978846, %v1243_v5  ;;  %v2464_v55 = vpop.eup %2463  ;;  %v1721_v5 = vld [vmem:[#allocation7 + $0x640] sm:$0xff] }
 0x18d   : > { %2018 = vmatpush1.msra.mxu0 %v1665_v32  ;;  %2131 = vmatpush1.msra.mxu1 %v1729_v14  ;;  %v1130_v6 = vmul.f32 %v1066_v44, %v3169_v28  ;;  %v1725_v32 = vld [vmem:[#allocation7 + $0x660] sm:$0xff]  ;;  %v1132_v41 = vmul.f32 %v1068_v60, %v3177_v46  ;;  %2475 = vtanh.f32 %v3160_v3  ;;  %v1185_v16 = vmul.f32 %v1121_v4, %v3120_v61  ;;  %v1722_v59 = vld [vmem:[#allocation7 + $0x648] sm:$0xff]  ;;  %v1656_v4 = vld [vmem:[#allocation7 + $0x438] sm:$0xff] }
 0x18e   : > { %2019 = vmatprep.subr.mxu0 %v1664_v52  ;;  %2132 = vmatprep.subr.mxu1 %v1728_v54  ;;  %v1187_v14 = vmul.f32 %v1123_v7, %v3122_v62  ;;  %2477 = vtanh.f32 %v3142_v51  ;;  %v1723_v52 = vld [vmem:[#allocation7 + $0x650] sm:$0xff]  ;;  %v1306_v44 = vmul.f32 0.7978846, %v1242_v9  ;;  %v1250_v3 = vadd.f32 %v1186_v39, %v3131_v21  ;;  %v1657_v60 = vld [vmem:[#allocation7 + $0x440] sm:$0xff]  ;;  %v2466_v9 = vpop.eup %2465 }
 0x18f   : > { %2020 = vmatpush1.msra.mxu0 %v1663_v47  ;;  %2133 = vmatpush1.msra.mxu1 %v1727_v29  ;;  %v1193_v37 = vmul.f32 %v1129_v10, %v3156_v2  ;;  %2479 = vtanh.f32 %v3144_v63  ;;  %v1195_v54 = vmul.f32 %v1131_v43, %v3158_v0  ;;  %v1194_v51 = vmul.f32 %v1130_v6, %v3169_v28 }
 0x190   : > { %2021 = vmatprep.subr.mxu0 %v1662_v8  ;;  %2134 = vmatprep.subr.mxu1 %v1726_v18  ;;  %v1403_v47 = vadd.f32 1.0, %v2464_v55  ;;  %2481 = vtanh.f32 %v3179_v45  ;;  %v1308_v7 = vmul.f32 0.7978846, %v1244_v40  ;;  %v1252_v29 = vadd.f32 %v1188_v48, %v3133_v22  ;;  %v1720_v8 = vld [vmem:[#allocation7 + $0x638] sm:$0xff]  ;;  %v1655_v18 = vld [vmem:[#allocation7 + $0x430] sm:$0xff]  ;;  %v1653_v48 = vld [vmem:[#allocation7 + $0x420] sm:$0xff] }
 0x191   : > { %2022 = vmatpush1.msra.mxu0 %v1661_v20  ;;  %2135 = vmatpush1.msra.mxu1 %v1725_v32  ;;  %v1196_v63 = vmul.f32 %v1132_v41, %v3177_v46  ;;  %2483 = vtanh.f32 %v3184_v27  ;;  %v1249_v39 = vadd.f32 %v1185_v16, %v3120_v61  ;;  %v1251_v10 = vadd.f32 %v1187_v14, %v3122_v62  ;;  %v1719_v20 = vld [vmem:[#allocation7 + $0x630] sm:$0xff]  ;;  %v1654_v32 = vld [vmem:[#allocation7 + $0x428] sm:$0xff]  ;;  %v1716_v16 = vld [vmem:[#allocation7 + $0x618] sm:$0xff] }
 0x192   : > { %2023 = vmatprep.subr.mxu0 %v1660_v35  ;;  %2136 = vmatprep.subr.mxu1 %v1724_v33  ;;  %v1467_v45 = vmul.f32 %v1403_v47, %v3053_v50  ;;  %2485 = vtanh.f32 %v3165_v19  ;;  %v1257_v43 = vadd.f32 %v1193_v37, %v3156_v2  ;;  %v1410_v6 = vadd.f32 1.0, %v2466_v9  ;;  %v1718_v35 = vld [vmem:[#allocation7 + $0x628] sm:$0xff]  ;;  %v2468_v14 = vpop.eup %2467 }
 0x193   : > { %2024 = vmatpush1.msra.mxu0 %v1659_v12  ;;  %2137 = vmatpush1.msra.mxu1 %v1723_v52  ;;  %v964_v27 = vmul.f32 0.5, %v3034_v11  ;;  %2487 = vtanh.f32 %v3172_v49  ;;  %v1314_v40 = vmul.f32 0.7978846, %v1250_v3  ;;  %v1259_v50 = vadd.f32 %v1195_v54, %v3158_v0  ;;  %v1717_v49 = vld [vmem:[#allocation7 + $0x620] sm:$0xff]  ;;  %v1652_v12 = vld [vmem:[#allocation7 + $0x418] sm:$0xff]  ;;  %v1650_v54 = vld [vmem:[#allocation7 + $0x408] sm:$0xff] }
 0x194   : > { %2025 = vmatprep.subr.mxu0 %v1658_v53  ;;  %2138 = vmatprep.subr.mxu1 %v1722_v59  ;;  %v1258_v19 = vadd.f32 %v1194_v51, %v3169_v28  ;;  %2489 = vtanh.f32 %v1306_v44  ;;  %v1316_v41 = vmul.f32 0.7978846, %v1252_v29  ;;  %v1260_v33 = vadd.f32 %v1196_v63, %v3177_v46  ;;  %v1651_v44 = vld [vmem:[#allocation7 + $0x410] sm:$0xff] }
 0x195   : > { %2026 = vmatpush1.msra.mxu0 %v1657_v60  ;;  %2139 = vmatpush1.msra.mxu1 %v1721_v5  ;;  %v1474_v11 = vmul.f32 %v1410_v6, %v3106_v42  ;;  %2491 = vtanh.f32 %v1308_v7  ;;  %v1313_v52 = vmul.f32 0.7978846, %v1249_v39  ;;  %v1315_v53 = vmul.f32 0.7978846, %v1251_v10  ;;  %v2470_v3 = vpop.eup %2469  ;;  %v1715_v60 = vld [vmem:[#allocation7 + $0x610] sm:$0xff]  ;;  %v1649_v10 = vld [vmem:[#allocation7 + $0x400] sm:$0xff] }
 0x196   : > { %2027 = vmatprep.subr.mxu0 %v1656_v4  ;;  %1961 = vmatmul.mubr.f32.gmra.mxu1 %v1467_v45  ;;  %v970_v55 = vmul.f32 0.5, %v3042_v30  ;;  %2493 = vtanh.f32 %v3201_v23  ;;  %v1321_v37 = vmul.f32 0.7978846, %v1257_v43  ;;  %v1412_v42 = vadd.f32 1.0, %v2468_v14  ;;  %v1714_v23 = vld [vmem:[#allocation7 + $0x608] sm:$0xff]  ;;  %v1712_v6 = vld [vmem:[#allocation7 + $0x5f8] sm:$0xff] }
 0x197   : > { %2140 = vmatprep.subr.mxu1 %v1720_v8  ;;  %2028 = vmatpush1.msra.mxu0 %v1655_v18  ;;  %v972_v59 = vmul.f32 0.5, %v3044_v31  ;;  %2495 = vtanh.f32 %v3210_v1  ;;  %v2472_v51 = vpop.eup %2471  ;;  %v1323_v47 = vmul.f32 0.7978846, %v1259_v50  ;;  %v1322_v5 = vmul.f32 0.7978846, %v1258_v19  ;;  %v1713_v31 = vld [vmem:[#allocation7 + $0x600] sm:$0xff] }
 0x198   : > { %2141 = vmatpush1.msra.mxu1 %v1719_v20  ;;  %2029 = vmatprep.subr.mxu0 %v1654_v32  ;;  %v1409_v30 = vadd.f32 1.0, %v2470_v3  ;;  %2497 = vtanh.f32 %v1314_v40  ;;  %v1324_v7 = vmul.f32 0.7978846, %v1260_v33  ;;  %v1476_v29 = vmul.f32 %v1412_v42, %v964_v27 }
 0x199   : > { %2142 = vmatprep.subr.mxu1 %v1718_v35  ;;  %1853 = vmatprep.mubr.f32.mxu0 %v1474_v11  ;;  %v2474_v4 = vpop.eup %2473  ;;  %v1411_v63 = vadd.f32 1.0, %v2472_v51  ;;  %2499 = vtanh.f32 %v1316_v41  ;;  %v969_v39 = vmul.f32 0.5, %v3037_v25  ;;  %v971_v43 = vmul.f32 0.5, %v3039_v26  ;;  %v1776_v35 = vld [vmem:[#allocation7 + $0x7f8] sm:$0xff]  ;;  %v1775_v26 = vld [vmem:[#allocation7 + $0x7f0] sm:$0xff] }
 0x19a   : > { %2030 = vmatpush1.msra.mxu0 %v1653_v48  ;;  %2143 = vmatpush1.msra.mxu1 %v1717_v49  ;;  %v2476_v1 = vpop.eup %2475  ;;  %v1473_v8 = vmul.f32 %v1409_v30, %v3066_v34  ;;  %v1418_v9 = vadd.f32 1.0, %v2474_v4  ;;  %2501 = vtanh.f32 %v1313_v52  ;;  %v978_v25 = vmul.f32 0.5, %v3070_v56  ;;  %v1711_v56 = vld [vmem:[#allocation7 + $0x5f0] sm:$0xff] }
 0x19b   : > { %2031 = vmatprep.subr.mxu0 %v1652_v12  ;;  %2144 = vmatprep.subr.mxu1 %v1716_v16  ;;  %v2478_v45 = vpop.eup %2477  ;;  %v1475_v18 = vmul.f32 %v1411_v63, %v3077_v57  ;;  %v1420_v20 = vadd.f32 1.0, %v2476_v1  ;;  %2503 = vtanh.f32 %v1315_v53  ;;  %v980_v57 = vmul.f32 0.5, %v3072_v58  ;;  %v1710_v58 = vld [vmem:[#allocation7 + $0x5e8] sm:$0xff]  ;;  %v1772_v1 = vld [vmem:[#allocation7 + $0x7d8] sm:$0xff] }
 0x19c   : > { %2032 = vmatpush1.msra.mxu0 %v1651_v44  ;;  %2145 = vmatpush1.msra.mxu1 %v1715_v60  ;;  %v2480_v27 = vpop.eup %2479  ;;  %v1482_v34 = vmul.f32 %v1418_v9, %v970_v55  ;;  %v1417_v32 = vadd.f32 1.0, %v2478_v45  ;;  %2505 = vtanh.f32 %v1322_v5  ;;  %v977_v11 = vmul.f32 0.5, %v3057_v17  ;;  %v1774_v17 = vld [vmem:[#allocation7 + $0x7e8] sm:$0xff]  ;;  %v1773_v60 = vld [vmem:[#allocation7 + $0x7e0] sm:$0xff] }
 0x19d   : > { %2033 = vmatprep.subr.mxu0 %v1650_v54  ;;  %1966 = vmatprep.mubr.f32.mxu1 %v1476_v29  ;;  %v2482_v40 = vpop.eup %2481  ;;  %v1484_v50 = vmul.f32 %v1420_v20, %v972_v59  ;;  %v1419_v19 = vadd.f32 1.0, %v2480_v27  ;;  %2507 = vtanh.f32 %v1324_v7  ;;  %v979_v14 = vmul.f32 0.5, %v3059_v24  ;;  %v1709_v5 = vld [vmem:[#allocation7 + $0x5e0] sm:$0xff]  ;;  %v1708_v7 = vld [vmem:[#allocation7 + $0x5d8] sm:$0xff] }
 0x19e   : > { %2146 = vmatprep.subr.mxu1 %v1714_v23  ;;  %1854 = vmatmul.mubr.f32.gmra.mxu0 %v1473_v8  ;;  %v2484_v48 = vpop.eup %2483  ;;  %v1481_v41 = vmul.f32 %v1417_v32, %v969_v39  ;;  %v1426_v33 = vadd.f32 1.0, %v2482_v40  ;;  %2509 = vtanh.f32 %v1321_v37  ;;  %v986_v44 = vmul.f32 0.5, %v3098_v36 }
 0x19f   : > { %2147 = vmatpush1.msra.mxu1 %v1713_v31  ;;  %2034 = vmatpush1.msra.mxu0 %v1649_v10  ;;  %v2486_v49 = vpop.eup %2485  ;;  %v1483_v12 = vmul.f32 %v1419_v19, %v971_v43  ;;  %v1428_v16 = vadd.f32 1.0, %v2484_v48  ;;  %2511 = vtanh.f32 %v1323_v47  ;;  %v988_v59 = vmul.f32 0.5, %v3100_v38  ;;  %v1771_v10 = vld [vmem:[#allocation7 + $0x7d0] sm:$0xff] }
 0x1a0   : > { %1967 = vmatmul.mubr.f32.gmra.mxu1 %v1475_v18  ;;  %1859 = vmatprep.mubr.f32.mxu0 %v1482_v34  ;;  %v2488_v52 = vpop.eup %2487  ;;  %v1490_v53 = vmul.f32 %v1426_v33, %v978_v25  ;;  %v1425_v55 = vadd.f32 1.0, %v2486_v49  ;;  %v985_v47 = vmul.f32 0.5, %v3087_v13  ;;  %v987_v4 = vmul.f32 0.5, %v3089_v15 }
 0x1a1   : > { %2035 = vmatprep.subr.mxu0 %v1712_v6  ;;  %1972 = vmatprep.mubr.f32.mxu1 %v1484_v50  ;;  %v2490_v3 = vpop.eup %2489  ;;  %v1492_v37 = vmul.f32 %v1428_v16, %v980_v57  ;;  %v1427_v42 = vadd.f32 1.0, %v2488_v52  ;;  %v994_v31 = vmul.f32 0.5, %v3131_v21  ;;  %v996_v39 = vmul.f32 0.5, %v3133_v22  ;;  %v1707_v21 = vld [vmem:[#allocation7 + $0x5d0] sm:$0xff] }
 0x1a2   : > { %2148 = vmatprep.subr.mxu1 %v1776_v35  ;;  %1860 = vmatmul.mubr.f32.gmra.mxu0 %v1481_v41  ;;  %v2492_v24 = vpop.eup %2491  ;;  %v1489_v54 = vmul.f32 %v1425_v55, %v977_v11  ;;  %v1434_v51 = vadd.f32 1.0, %v2490_v3  ;;  %v993_v20 = vmul.f32 0.5, %v3120_v61  ;;  %v995_v22 = vmul.f32 0.5, %v3122_v62  ;;  %v1706_v35 = vld [vmem:[#allocation7 + $0x5c8] sm:$0xff] }
 0x1a3   : > { %2149 = vmatpush2.msra.mxu1 %v1775_v26  ;;  %2036 = vmatpush2.msra.mxu0 %v1711_v56  ;;  %v2494_v30 = vpop.eup %2493  ;;  %v1491_v36 = vmul.f32 %v1427_v42, %v979_v14  ;;  %v1436_v23 = vadd.f32 1.0, %v2492_v24  ;;  %v1002_v19 = vmul.f32 0.5, %v3169_v28  ;;  %v1770_v41 = vld [vmem:[#allocation7 + $0x7c8] sm:$0xff]  ;;  %v1004_v56 = vmul.f32 0.5, %v3177_v46  ;;  %v1704_v42 = vld [vmem:[#allocation7 + $0x5b8] sm:$0xff] }
 0x1a4   : > { %1973 = vmatmul.mubr.f32.gmra.mxu1 %v1483_v12  ;;  %1865 = vmatprep.mubr.f32.mxu0 %v1490_v53  ;;  %v2496_v29 = vpop.eup %2495  ;;  %v1498_v38 = vmul.f32 %v1434_v51, %v986_v44  ;;  %v1433_v63 = vadd.f32 1.0, %v2494_v30  ;;  %v1769_v12 = vld [vmem:[#allocation7 + $0x7c0] sm:$0xff] }
 0x1a5   : > { %2037 = vmatprep.subr.mxu0 %v1710_v58  ;;  %1978 = vmatprep.mubr.f32.mxu1 %v1492_v37  ;;  %v2498_v8 = vpop.eup %2497  ;;  %v1500_v13 = vmul.f32 %v1436_v23, %v988_v59  ;;  %v1435_v9 = vadd.f32 1.0, %v2496_v29  ;;  %v1001_v58 = vmul.f32 0.5, %v3156_v2  ;;  %v1705_v44 = vld [vmem:[#allocation7 + $0x5c0] sm:$0xff]  ;;  %v1003_v37 = vmul.f32 0.5, %v3158_v0  ;;  %v1703_v29 = vld [vmem:[#allocation7 + $0x5b0] sm:$0xff] }
 0x1a6   : > { %2150 = vmatprep.subr.mxu1 %v1774_v17  ;;  %1866 = vmatmul.mubr.f32.gmra.mxu0 %v1489_v54  ;;  %v2500_v45 = vpop.eup %2499  ;;  %v1497_v15 = vmul.f32 %v1433_v63, %v985_v47  ;;  %v1442_v18 = vadd.f32 1.0, %v2498_v8  ;;  %v1768_v47 = vld [vmem:[#allocation7 + $0x7b8] sm:$0xff] }
 0x1a7   : > { %2151 = vmatpush2.msra.mxu1 %v1773_v60  ;;  %2038 = vmatpush2.msra.mxu0 %v1709_v5  ;;  %v2502_v27 = vpop.eup %2501  ;;  %v1499_v34 = vmul.f32 %v1435_v9, %v987_v4  ;;  %v1444_v32 = vadd.f32 1.0, %v2500_v45 }
 0x1a8   : > { %1979 = vmatmul.mubr.f32.gmra.mxu1 %v1491_v36  ;;  %1871 = vmatprep.mubr.f32.mxu0 %v1498_v38  ;;  %v2504_v40 = vpop.eup %2503  ;;  %v1506_v50 = vmul.f32 %v1442_v18, %v994_v31  ;;  %v1441_v61 = vadd.f32 1.0, %v2502_v27  ;;  %v1767_v36 = vld [vmem:[#allocation7 + $0x7b0] sm:$0xff]  ;;  %v1702_v31 = vld [vmem:[#allocation7 + $0x5a8] sm:$0xff]  ;;  %v1764_v18 = vld [vmem:[#allocation7 + $0x798] sm:$0xff] }
 0x1a9   : > { %2039 = vmatprep.subr.mxu0 %v1708_v7  ;;  %1984 = vmatprep.mubr.f32.mxu1 %v1500_v13  ;;  %v2506_v33 = vpop.eup %2505  ;;  %v1508_v62 = vmul.f32 %v1444_v32, %v996_v39  ;;  %v1443_v11 = vadd.f32 1.0, %v2504_v40  ;;  %v1701_v39 = vld [vmem:[#allocation7 + $0x5a0] sm:$0xff]  ;;  %v1763_v32 = vld [vmem:[#allocation7 + $0x790] sm:$0xff] }
 0x1aa   : > { %2152 = vmatprep.subr.mxu1 %v1772_v1  ;;  %1872 = vmatmul.mubr.f32.gmra.mxu0 %v1497_v15  ;;  %v2508_v16 = vpop.eup %2507  ;;  %v1505_v28 = vmul.f32 %v1441_v61, %v993_v20  ;;  %v1450_v14 = vadd.f32 1.0, %v2506_v33  ;;  %v1766_v1 = vld [vmem:[#allocation7 + $0x7a8] sm:$0xff]  ;;  %v1700_v15 = vld [vmem:[#allocation7 + $0x598] sm:$0xff]  ;;  %v1697_v40 = vld [vmem:[#allocation7 + $0x580] sm:$0xff] }
 0x1ab   : > { %v3254_v43 = vpop.f32.mrf.mxu0  ;;  %v3256_v6 = vpop.f32.mrf.mxu1  ;;  %2153 = vmatpush2.msra.mxu1 %v1771_v10  ;;  %2040 = vmatpush2.msra.mxu0 %v1707_v21  ;;  %v1507_v46 = vmul.f32 %v1443_v11, %v995_v22  ;;  %v1452_v3 = vadd.f32 1.0, %v2508_v16  ;;  %v1765_v10 = vld [vmem:[#allocation7 + $0x7a0] sm:$0xff] }
 0x1ac   : > { %v1013_v25 = vmul.f32 0.044715, %v3254_v43  ;;  %v1015_v57 = vmul.f32 0.044715, %v3256_v6  ;;  %1985 = vmatmul.mubr.f32.gmra.mxu1 %v1499_v34  ;;  %1877 = vmatprep.mubr.f32.mxu0 %v1506_v50  ;;  %v2510_v17 = vpop.eup %2509  ;;  %v1514_v60 = vmul.f32 %v1450_v14, %v1002_v19  ;;  %v1699_v34 = vld [vmem:[#allocation7 + $0x590] sm:$0xff]  ;;  %v1761_v11 = vld [vmem:[#allocation7 + $0x780] sm:$0xff] }
 0x1ad   : > { %v3262_v26 = vpop.f32.mrf.mxu0  ;;  %v3264_v48 = vpop.f32.mrf.mxu1  ;;  %2041 = vmatprep.subr.mxu0 %v1706_v35  ;;  %1990 = vmatprep.mubr.f32.mxu1 %v1508_v62  ;;  %v1449_v2 = vadd.f32 1.0, %v2510_v17  ;;  %v1516_v5 = vmul.f32 %v1452_v3, %v1004_v56  ;;  %v1762_v35 = vld [vmem:[#allocation7 + $0x788] sm:$0xff]  ;;  %v1696_v56 = vld [vmem:[#allocation7 + $0x578] sm:$0xff] }
 0x1ae   : > { %v1077_v49 = vmul.f32 %v1013_v25, %v3254_v43  ;;  %v1079_v52 = vmul.f32 %v1015_v57, %v3256_v6  ;;  %2154 = vmatprep.subr.mxu1 %v1770_v41  ;;  %v2512_v59 = vpop.eup %2511  ;;  %1878 = vmatmul.mubr.f32.gmra.mxu0 %v1505_v28  ;;  %v1014_v63 = vmul.f32 0.044715, %v3262_v26  ;;  %v1016_v45 = vmul.f32 0.044715, %v3264_v48  ;;  %v1698_v25 = vld [vmem:[#allocation7 + $0x588] sm:$0xff]  ;;  %v1760_v14 = vld [vmem:[#allocation7 + $0x778] sm:$0xff] }
 0x1af   : > { %v3270_v53 = vpop.f32.mrf.mxu0  ;;  %v3272_v55 = vpop.f32.mrf.mxu1  ;;  %2155 = vmatpush2.msra.mxu1 %v1769_v12  ;;  %v1451_v30 = vadd.f32 1.0, %v2512_v59  ;;  %2042 = vmatpush2.msra.mxu0 %v1705_v44  ;;  %v1513_v0 = vmul.f32 %v1449_v2, %v1001_v58  ;;  %v1695_v58 = vld [vmem:[#allocation7 + $0x570] sm:$0xff]  ;;  %v1694_v17 = vld [vmem:[#allocation7 + $0x568] sm:$0xff] }
 0x1b0   : > { %v1141_v24 = vmul.f32 %v1077_v49, %v3254_v43  ;;  %1991 = vmatmul.mubr.f32.gmra.mxu1 %v1507_v46  ;;  %1883 = vmatprep.mubr.f32.mxu0 %v1514_v60  ;;  %v1143_v23 = vmul.f32 %v1079_v52, %v3256_v6  ;;  %v1078_v22 = vmul.f32 %v1014_v63, %v3262_v26  ;;  %v1021_v61 = vmul.f32 0.044715, %v3270_v53  ;;  %v1759_v44 = vld [vmem:[#allocation7 + $0x770] sm:$0xff]  ;;  %v1758_v59 = vld [vmem:[#allocation7 + $0x768] sm:$0xff]  ;;  %v1693_v60 = vld [vmem:[#allocation7 + $0x560] sm:$0xff] }
 0x1b1   : > { %v3276_v54 = vpop.f32.mrf.mxu0  ;;  %v3278_v51 = vpop.f32.mrf.mxu1  ;;  %2043 = vmatprep.subr.mxu0 %v1704_v42  ;;  %1996 = vmatprep.mubr.f32.mxu1 %v1516_v5  ;;  %v1515_v38 = vmul.f32 %v1451_v30, %v1003_v37  ;;  %v1023_v19 = vmul.f32 0.044715, %v3272_v55  ;;  %v1080_v33 = vmul.f32 %v1016_v45, %v3264_v48  ;;  %v1757_v5 = vld [vmem:[#allocation7 + $0x760] sm:$0xff]  ;;  %v1692_v30 = vld [vmem:[#allocation7 + $0x558] sm:$0xff]  ;;  %v1691_v63 = vld [vmem:[#allocation7 + $0x550] sm:$0xff] }
 0x1b2   : > { %2156 = vmatprep.subr.mxu1 %v1768_v47  ;;  %1884 = vmatmul.mubr.f32.gmra.mxu0 %v1513_v0  ;;  %v1205_v8 = vadd.f32 %v1141_v24, %v3254_v43  ;;  %v1207_v20 = vadd.f32 %v1143_v23, %v3256_v6  ;;  %v1022_v62 = vmul.f32 0.044715, %v3276_v54  ;;  %v1024_v12 = vmul.f32 0.044715, %v3278_v51 }
 0x1b3   : > { %v3281_v4 = vpop.f32.mrf.mxu0  ;;  %v3283_v7 = vpop.f32.mrf.mxu1  ;;  %2157 = vmatpush2.msra.mxu1 %v1767_v36  ;;  %2044 = vmatpush2.msra.mxu0 %v1703_v29  ;;  %v1142_v52 = vmul.f32 %v1078_v22, %v3262_v26  ;;  %v1085_v46 = vmul.f32 %v1021_v61, %v3270_v53  ;;  %v1087_v3 = vmul.f32 %v1023_v19, %v3272_v55  ;;  %v1752_v61 = vld [vmem:[#allocation7 + $0x738] sm:$0xff]  ;;  %v3340_v19 = vmul.f32 0.5, %v3256_v6 }
 0x1b4   : > { %1997 = vmatmul.mubr.f32.gmra.mxu1 %v1515_v38  ;;  %2045 = vmatprep.subr.mxu0 %v1702_v31  ;;  %v1269_v50 = vmul.f32 0.7978846, %v1205_v8  ;;  %v1271_v49 = vmul.f32 0.7978846, %v1207_v20  ;;  %v1029_v37 = vmul.f32 0.044715, %v3281_v4  ;;  %v1144_v2 = vmul.f32 %v1080_v33, %v3264_v48 }
 0x1b5   : > { %v3287_v13 = vpop.f32.mrf.mxu0  ;;  %v3289_v9 = vpop.f32.mrf.mxu1  ;;  %2158 = vmatprep.subr.mxu1 %v1766_v1  ;;  %2046 = vmatpush2.msra.mxu0 %v1701_v39  ;;  %v1086_v24 = vmul.f32 %v1022_v62, %v3276_v54  ;;  %v1031_v47 = vmul.f32 0.044715, %v3283_v7  ;;  %v1088_v36 = vmul.f32 %v1024_v12, %v3278_v51  ;;  %v1756_v38 = vld [vmem:[#allocation7 + $0x758] sm:$0xff]  ;;  %v1206_v31 = vadd.f32 %v1142_v52, %v3262_v26  ;;  %v1755_v8 = vld [vmem:[#allocation7 + $0x750] sm:$0xff]  ;;  %v1690_v39 = vld [vmem:[#allocation7 + $0x548] sm:$0xff] }
 0x1b6   : > { %2159 = vmatpush2.msra.mxu1 %v1765_v10  ;;  %2047 = vmatprep.subr.mxu0 %v1700_v15  ;;  %2513 = vtanh.f32 %v1269_v50  ;;  %v1030_v0 = vmul.f32 0.044715, %v3287_v13  ;;  %v1032_v23 = vmul.f32 0.044715, %v3289_v9  ;;  %v3328_v10 = vmul.f32 0.5, %v3254_v43  ;;  %v1688_v50 = vld [vmem:[#allocation7 + $0x538] sm:$0xff] }
 0x1b7   : > { %v3293_v21 = vpop.f32.mrf.mxu0  ;;  %v3295_v27 = vpop.f32.mrf.mxu1  ;;  %2160 = vmatprep.subr.mxu1 %v1764_v18  ;;  %2048 = vmatpush2.msra.mxu0 %v1699_v34  ;;  %2515 = vtanh.f32 %v1271_v49  ;;  %v1149_v45 = vmul.f32 %v1085_v46, %v3270_v53  ;;  %v1151_v15 = vmul.f32 %v1087_v3, %v3272_v55  ;;  %v1093_v18 = vmul.f32 %v1029_v37, %v3281_v4  ;;  %v1754_v34 = vld [vmem:[#allocation7 + $0x748] sm:$0xff]  ;;  %v1687_v49 = vld [vmem:[#allocation7 + $0x530] sm:$0xff] }
 0x1b8   : > { %2161 = vmatpush2.msra.mxu1 %v1763_v32  ;;  %2049 = vmatprep.subr.mxu0 %v1698_v25  ;;  %v1037_v1 = vmul.f32 0.044715, %v3293_v21  ;;  %v1689_v32 = vld [vmem:[#allocation7 + $0x540] sm:$0xff]  ;;  %v1208_v22 = vadd.f32 %v1144_v2, %v3264_v48  ;;  %v1150_v25 = vmul.f32 %v1086_v24, %v3276_v54  ;;  %v1039_v43 = vmul.f32 0.044715, %v3295_v27  ;;  %v1751_v12 = vld [vmem:[#allocation7 + $0x730] sm:$0xff] }
 0x1b9   : > { %v3300_v57 = vpop.f32.mrf.mxu0  ;;  %v3302_v41 = vpop.f32.mrf.mxu1  ;;  %2162 = vmatprep.subr.mxu1 %v1762_v35  ;;  %2050 = vmatpush2.msra.mxu0 %v1697_v40  ;;  %v1095_v35 = vmul.f32 %v1031_v47, %v3283_v7  ;;  %v1753_v40 = vld [vmem:[#allocation7 + $0x740] sm:$0xff]  ;;  %v1152_v33 = vmul.f32 %v1088_v36, %v3278_v51  ;;  %v1094_v62 = vmul.f32 %v1030_v0, %v3287_v13  ;;  %v1684_v0 = vld [vmem:[#allocation7 + $0x518] sm:$0xff] }
 0x1ba   : > { %2163 = vmatpush2.msra.mxu1 %v1761_v11  ;;  %2051 = vmatprep.subr.mxu0 %v1696_v56  ;;  %v1096_v11 = vmul.f32 %v1032_v23, %v3289_v9  ;;  %v1101_v52 = vmul.f32 %v1037_v1, %v3293_v21  ;;  %v1038_v6 = vmul.f32 0.044715, %v3300_v57  ;;  %v1215_v46 = vadd.f32 %v1151_v15, %v3272_v55  ;;  %v1685_v2 = vld [vmem:[#allocation7 + $0x520] sm:$0xff] }
 0x1bb   : > { %v3307_v16 = vpop.f32.mrf.mxu0  ;;  %v3309_v28 = vpop.f32.mrf.mxu1  ;;  %2164 = vmatprep.subr.mxu1 %v1760_v14  ;;  %2052 = vmatpush2.msra.mxu0 %v1695_v58  ;;  %v1686_v14 = vld [vmem:[#allocation7 + $0x528] sm:$0xff]  ;;  %v3347_v58 = vmul.f32 0.7978846, %v1206_v31  ;;  %v1157_v3 = vmul.f32 %v1093_v18, %v3281_v4  ;;  %v1214_v24 = vadd.f32 %v1150_v25, %v3276_v54  ;;  %v1159_v47 = vmul.f32 %v1095_v35, %v3283_v7  ;;  %v1749_v36 = vld [vmem:[#allocation7 + $0x720] sm:$0xff] }
 0x1bc   : > { %3690 = vst [vmem:[#allocation12_spill] sm:$0xff] %v3307_v16  ;;  %3691 = vst [vmem:[#allocation13_spill] sm:$0xff] %v3309_v28  ;;  %2165 = vmatpush2.msra.mxu1 %v1759_v44  ;;  %2053 = vmatprep.subr.mxu0 %v1694_v17  ;;  %v1040_v44 = vmul.f32 0.044715, %v3302_v41  ;;  %v1213_v17 = vadd.f32 %v1149_v45, %v3270_v53  ;;  %v1045_v37 = vmul.f32 0.044715, %v3307_v16 }
 0x1bd   : > { %v3315_v42 = vpop.f32.mrf.mxu0  ;;  %v3323_v29 = vpop.f32.mrf.mxu1  ;;  %2166 = vmatprep.subr.mxu1 %v1758_v59  ;;  %2054 = vmatpush2.msra.mxu0 %v1693_v60  ;;  %v1750_v60 = vld [vmem:[#allocation7 + $0x728] sm:$0xff]  ;;  %v1216_v23 = vadd.f32 %v1152_v33, %v3278_v51  ;;  %v3368_v45 = vmul.f32 0.7978846, %v1208_v22  ;;  %v1165_v15 = vmul.f32 %v1101_v52, %v3293_v21  ;;  %v1102_v18 = vmul.f32 %v1038_v6, %v3300_v57  ;;  %v1681_v33 = vld [vmem:[#allocation7 + $0x500] sm:$0xff] }
 0x1be   : > { %3692 = vst [vmem:[#allocation14_spill] sm:$0xff] %v3315_v42  ;;  %3693 = vst [vmem:[#allocation15_spill] sm:$0xff] %v3323_v29  ;;  %2167 = vmatpush2.msra.mxu1 %v1757_v5  ;;  %2055 = vmatprep.subr.mxu0 %v1692_v30  ;;  %v1103_v5 = vmul.f32 %v1039_v43, %v3295_v27  ;;  %v1047_v30 = vmul.f32 0.044715, %v3309_v28  ;;  %v1046_v31 = vmul.f32 0.044715, %v3315_v42  ;;  %2517 = vtanh.f32 %v3347_v58 }
 0x1bf   : > { %v3333_v20 = vpop.f32.mrf.mxu0  ;;  %2168 = vmatprep.subr.mxu1 %v1756_v38  ;;  %2056 = vmatpush2.msra.mxu0 %v1691_v63  ;;  %v3345_v56 = vpop.f32.mrf.mxu1  ;;  %v1158_v38 = vmul.f32 %v1094_v62, %v3287_v13  ;;  %v1160_v63 = vmul.f32 %v1096_v11, %v3289_v9  ;;  %v1682_v25 = vld [vmem:[#allocation7 + $0x508] sm:$0xff]  ;;  %v3373_v35 = vmul.f32 0.7978846, %v1213_v17  ;;  %v1221_v43 = vadd.f32 %v1157_v3, %v3281_v4  ;;  %v1745_v52 = vld [vmem:[#allocation7 + $0x700] sm:$0xff] }
 0x1c0   : > { %2169 = vmatpush2.msra.mxu1 %v1755_v8  ;;  %2057 = vmatprep.subr.mxu0 %v1690_v39  ;;  %v1748_v8 = vld [vmem:[#allocation7 + $0x718] sm:$0xff]  ;;  %v1683_v39 = vld [vmem:[#allocation7 + $0x510] sm:$0xff]  ;;  %v3380_v11 = vmul.f32 0.7978846, %v1215_v46  ;;  %v3385_v6 = vmul.f32 0.7978846, %v1214_v24  ;;  %v1110_v3 = vmul.f32 %v1046_v31, %v3315_v42  ;;  %2519 = vtanh.f32 %v3368_v45 }
 0x1c1   : > { %2170 = vmatprep.subr.mxu1 %v1754_v34  ;;  %2058 = vmatpush2.msra.mxu0 %v1689_v32  ;;  %v3356_v59 = vpop.f32.mrf.mxu0  ;;  %v3366_v1 = vpop.f32.mrf.mxu1  ;;  %v1104_v34 = vmul.f32 %v1040_v44, %v3302_v41  ;;  %v1747_v32 = vld [vmem:[#allocation7 + $0x710] sm:$0xff]  ;;  %v1222_v44 = vadd.f32 %v1158_v38, %v3287_v13  ;;  %v1224_v17 = vadd.f32 %v1160_v63, %v3289_v9 }
 0x1c2   : > { %2171 = vmatpush2.msra.mxu1 %v1753_v40  ;;  %2059 = vmatprep.subr.mxu0 %v1688_v50  ;;  %v1109_v40 = vmul.f32 %v1045_v37, %v3307_v16  ;;  %v1048_v50 = vmul.f32 0.044715, %v3323_v29  ;;  %2521 = vtanh.f32 %v3385_v6 }
 0x1c3   : > { %2172 = vmatprep.subr.mxu1 %v1752_v61  ;;  %2060 = vmatpush2.msra.mxu0 %v1687_v49  ;;  %v3378_v22 = vpop.f32.mrf.mxu0  ;;  %v1746_v61 = vld [vmem:[#allocation7 + $0x708] sm:$0xff]  ;;  %v2514_v62 = vpop.eup %2513  ;;  %v1223_v49 = vadd.f32 %v1159_v47, %v3283_v7  ;;  %v1166_v47 = vmul.f32 %v1102_v18, %v3300_v57  ;;  %v1168_v24 = vmul.f32 %v1104_v34, %v3302_v41  ;;  %v3410_v18 = vmul.f32 0.7978846, %v1224_v17 }
 0x1c4   : > { %2173 = vmatpush2.msra.mxu1 %v1751_v12  ;;  %2061 = vmatprep.subr.mxu0 %v1686_v14  ;;  %v1167_v12 = vmul.f32 %v1103_v5, %v3295_v27  ;;  %v1111_v14 = vmul.f32 %v1047_v30, %v3309_v28  ;;  %v3390_v37 = vpop.f32.mrf.mxu1  ;;  %v2516_v46 = vpop.eup %2515  ;;  %v1397_v5 = vadd.f32 1.0, %v2514_v62  ;;  %v3397_v30 = vmul.f32 0.7978846, %v1221_v43 }
 0x1c5   : > { %2174 = vmatprep.subr.mxu1 %v1750_v60  ;;  %2062 = vmatpush2.msra.mxu0 %v1685_v2  ;;  %v3392_v60 = vmul.f32 0.7978846, %v1216_v23  ;;  %v1229_v2 = vadd.f32 %v1165_v15, %v3293_v21  ;;  %v3401_v38 = vpop.f32.mrf.mxu0  ;;  %v3403_v23 = vmul.f32 0.7978846, %v1223_v49  ;;  %v3408_v15 = vmul.f32 0.7978846, %v1222_v44 }
 0x1c6   : > { %2175 = vmatpush2.msra.mxu1 %v1749_v36  ;;  %2063 = vmatprep.subr.mxu0 %v1684_v0  ;;  %v1173_v36 = vmul.f32 %v1109_v40, %v3307_v16  ;;  %v1112_v0 = vmul.f32 %v1048_v50, %v3323_v29  ;;  %v1231_v63 = vadd.f32 %v1167_v12, %v3295_v27  ;;  %v1055_v50 = vmul.f32 0.044715, %v3345_v56 }
 0x1c7   : > { %2176 = vmatprep.subr.mxu1 %v1748_v8  ;;  %2064 = vmatpush2.msra.mxu0 %v1683_v39  ;;  %v1175_v31 = vmul.f32 %v1111_v14, %v3309_v28  ;;  %v1053_v8 = vmul.f32 0.044715, %v3333_v20  ;;  %v1399_v39 = vadd.f32 1.0, %v2516_v46  ;;  %v1174_v34 = vmul.f32 %v1110_v3, %v3315_v42  ;;  %v3426_v12 = vpop.f32.mrf.mxu0 }
 0x1c8   : > { %2177 = vmatpush2.msra.mxu1 %v1747_v32  ;;  %2065 = vmatprep.subr.mxu0 %v1682_v25  ;;  %v3413_v32 = vpop.f32.mrf.mxu1  ;;  %v3415_v25 = vmul.f32 0.7978846, %v1229_v2  ;;  %v1230_v43 = vadd.f32 %v1166_v47, %v3300_v57  ;;  %v1232_v40 = vadd.f32 %v1168_v24, %v3302_v41  ;;  %v1176_v62 = vmul.f32 %v1112_v0, %v3323_v29 }
 0x1c9   : > { %2178 = vmatprep.subr.mxu1 %v1746_v61  ;;  %2066 = vmatpush2.msra.mxu0 %v1681_v33  ;;  %v3421_v61 = vmul.f32 %v1397_v5, %v3328_v10  ;;  %v1237_v33 = vadd.f32 %v1173_v36, %v3307_v16  ;;  %v1054_v49 = vmul.f32 0.044715, %v3356_v59  ;;  %v3428_v14 = vmul.f32 0.7978846, %v1231_v63 }
 0x1ca   : > { %2179 = vmatpush2.msra.mxu1 %v1745_v52  ;;  %v1239_v52 = vadd.f32 %v1175_v31, %v3309_v28  ;;  %v1117_v44 = vmul.f32 %v1053_v8, %v3333_v20  ;;  %v1056_v17 = vmul.f32 0.044715, %v3366_v1  ;;  %v3434_v3 = vmul.f32 %v1399_v39, %v3340_v19  ;;  %v3439_v47 = vpop.f32.mrf.mxu1  ;;  %v3450_v39 = vpop.f32.mrf.mxu0 }
 0x1cb   : > { %v1238_v10 = vadd.f32 %v1174_v34, %v3315_v42  ;;  %v1061_v46 = vmul.f32 0.044715, %v3378_v22  ;;  %v1063_v2 = vmul.f32 0.044715, %v3390_v37  ;;  %v1294_v24 = vmul.f32 0.7978846, %v1230_v43 }
 0x1cc   : > { %v3441_v5 = vmul.f32 0.7978846, %v1232_v40  ;;  %v1119_v36 = vmul.f32 %v1055_v50, %v3345_v56  ;;  %v1062_v0 = vmul.f32 0.044715, %v3401_v38  ;;  %v3445_v63 = vmul.f32 0.7978846, %v1237_v33  ;;  %v3461_v16 = vpop.f32.mrf.mxu1 }
 0x1cd   : > { %v1240_v19 = vadd.f32 %v1176_v62, %v3323_v29  ;;  %v1118_v31 = vmul.f32 %v1054_v49, %v3356_v59  ;;  %v1064_v8 = vmul.f32 0.044715, %v3413_v32  ;;  %v3452_v34 = vmul.f32 0.7978846, %v1239_v52 }
 0x1ce   : > { %v1181_v43 = vmul.f32 %v1117_v44, %v3333_v20  ;;  %v1120_v40 = vmul.f32 %v1056_v17, %v3366_v1  ;;  %v1069_v50 = vmul.f32 0.044715, %v3426_v12  ;;  %v3457_v28 = vmul.f32 0.7978846, %v1238_v10 }
 0x1cf   : > { %v1125_v33 = vmul.f32 %v1061_v46, %v3378_v22  ;;  %v1127_v62 = vmul.f32 %v1063_v2, %v3390_v37  ;;  %v1183_v49 = vmul.f32 %v1119_v36, %v3345_v56  ;;  %v1126_v52 = vmul.f32 %v1062_v0, %v3401_v38 }
 0x1d0   : > { %v1071_v44 = vmul.f32 0.044715, %v3439_v47  ;;  %v1070_v17 = vmul.f32 0.044715, %v3450_v39  ;;  %v1304_v29 = vmul.f32 0.7978846, %v1240_v19  ;;  %v1182_v10 = vmul.f32 %v1118_v31, %v3356_v59 }
 0x1d1   : > { %v1128_v42 = vmul.f32 %v1064_v8, %v3413_v32  ;;  %v1184_v46 = vmul.f32 %v1120_v40, %v3366_v1  ;;  %v1133_v2 = vmul.f32 %v1069_v50, %v3426_v12  ;;  %v1072_v58 = vmul.f32 0.044715, %v3461_v16 }
 0x1d2   : > { %v1245_v36 = vadd.f32 %v1181_v43, %v3333_v20  ;;  %v1189_v0 = vmul.f32 %v1125_v33, %v3378_v22  ;;  %v1191_v19 = vmul.f32 %v1127_v62, %v3390_v37  ;;  %2523 = vtanh.f32 %v3392_v60 }
 0x1d3   : > { %v1190_v31 = vmul.f32 %v1126_v52, %v3401_v38  ;;  %v1135_v45 = vmul.f32 %v1071_v44, %v3439_v47  ;;  %v1134_v8 = vmul.f32 %v1070_v17, %v3450_v39  ;;  %2525 = vtanh.f32 %v3373_v35 }
 0x1d4   : > { %v1247_v40 = vadd.f32 %v1183_v49, %v3345_v56  ;;  %v1246_v6 = vadd.f32 %v1182_v10, %v3356_v59  ;;  %v1192_v43 = vmul.f32 %v1128_v42, %v3413_v32  ;;  %2527 = vtanh.f32 %v3380_v11 }
 0x1d5   : > { %v1248_v50 = vadd.f32 %v1184_v46, %v3366_v1  ;;  %v1197_v60 = vmul.f32 %v1133_v2, %v3426_v12  ;;  %v1136_v33 = vmul.f32 %v1072_v58, %v3461_v16  ;;  %2529 = vtanh.f32 %v3408_v15 }
 0x1d6   : > { %v3491_v62 = vmul.f32 0.7978846, %v1245_v36  ;;  %v1253_v35 = vadd.f32 %v1189_v0, %v3378_v22  ;;  %v1255_v49 = vadd.f32 %v1191_v19, %v3390_v37  ;;  %2531 = vtanh.f32 %v3410_v18 }
 0x1d7   : > { %v1254_v42 = vadd.f32 %v1190_v31, %v3401_v38  ;;  %v1199_v11 = vmul.f32 %v1135_v45, %v3439_v47  ;;  %v1198_v52 = vmul.f32 %v1134_v8, %v3450_v39  ;;  %2533 = vtanh.f32 %v3397_v30  ;;  %v2518_v30 = vpop.eup %2517 }
 0x1d8   : > { %v3500_v44 = vmul.f32 0.7978846, %v1247_v40  ;;  %v1310_v17 = vmul.f32 0.7978846, %v1246_v6  ;;  %v1256_v15 = vadd.f32 %v1192_v43, %v3413_v32  ;;  %2535 = vtanh.f32 %v3403_v23  ;;  %v2520_v8 = vpop.eup %2519 }
 0x1d9   : > { %v1312_v10 = vmul.f32 0.7978846, %v1248_v50  ;;  %v1261_v46 = vadd.f32 %v1197_v60, %v3426_v12  ;;  %v1200_v18 = vmul.f32 %v1136_v33, %v3461_v16  ;;  %2537 = vtanh.f32 %v1294_v24  ;;  %v2522_v6 = vpop.eup %2521 }
 0x1da   : > { %v3506_v2 = vmul.f32 0.7978846, %v1253_v35  ;;  %v3508_v58 = vmul.f32 0.7978846, %v1255_v49  ;;  %v950_v36 = vmul.f32 0.5, %v3262_v26  ;;  %2539 = vtanh.f32 %v3441_v5 }
 0x1db   : > { %v1318_v0 = vmul.f32 0.7978846, %v1254_v42  ;;  %v1263_v19 = vadd.f32 %v1199_v11, %v3439_v47  ;;  %v1262_v23 = vadd.f32 %v1198_v52, %v3450_v39  ;;  %2541 = vtanh.f32 %v3415_v25 }
 0x1dc   : > { %v1320_v31 = vmul.f32 0.7978846, %v1256_v15  ;;  %v1398_v45 = vadd.f32 1.0, %v2518_v30  ;;  %v952_v24 = vmul.f32 0.5, %v3264_v48  ;;  %2543 = vtanh.f32 %v3428_v14 }
 0x1dd   : > { %v3517_v40 = vmul.f32 0.7978846, %v1261_v46  ;;  %v1264_v26 = vadd.f32 %v1200_v18, %v3461_v16  ;;  %v958_v5 = vmul.f32 0.5, %v3276_v54  ;;  %2545 = vtanh.f32 %v3457_v28 }
 0x1de   : > { %v1462_v43 = vmul.f32 %v1398_v45, %v950_v36  ;;  %v1400_v50 = vadd.f32 1.0, %v2520_v8  ;;  %v960_v25 = vmul.f32 0.5, %v3278_v51  ;;  %2547 = vtanh.f32 %v1304_v29 }
 0x1df   : > { %v2524_v60 = vpop.eup %2523  ;;  %v3523_v33 = vmul.f32 0.7978846, %v1263_v19  ;;  %v1326_v48 = vmul.f32 0.7978846, %v1262_v23  ;;  %v1406_v14 = vadd.f32 1.0, %v2522_v6  ;;  %2549 = vtanh.f32 %v3445_v63 }
 0x1e0   : > { %v2526_v35 = vpop.eup %2525  ;;  %2067 = vmatprep.mubr.f32.mxu0 %v1462_v43  ;;  %v1464_v49 = vmul.f32 %v1400_v50, %v952_v24  ;;  %v1408_v42 = vadd.f32 1.0, %v2524_v60  ;;  %v957_v54 = vmul.f32 0.5, %v3270_v53  ;;  %2551 = vtanh.f32 %v3452_v34 }
 0x1e1   : > { %v2528_v28 = vpop.eup %2527  ;;  %v1328_v11 = vmul.f32 0.7978846, %v1264_v26  ;;  %2068 = vmatmul.mubr.f32.vlgmr.msra.gmra.mxu0 %v3421_v61  ;;  %v1470_v51 = vmul.f32 %v1406_v14, %v958_v5  ;;  %v1405_v29 = vadd.f32 1.0, %v2526_v35  ;;  %2553 = vtanh.f32 %v1310_v17  ;;  %v3694_v35 = vld [vmem:[#allocation14_spill] sm:$0xff] }
 0x1e2   : > { %v2530_v52 = vpop.eup %2529  ;;  %2180 = vmatprep.mubr.f32.mxu1 %v1464_v49  ;;  %v1472_v15 = vmul.f32 %v1408_v42, %v960_v25  ;;  %v959_v63 = vmul.f32 0.5, %v3272_v55  ;;  %v1407_v46 = vadd.f32 1.0, %v2528_v28  ;;  %2555 = vtanh.f32 %v1312_v10  ;;  %v3695_v42 = vld [vmem:[#allocation15_spill] sm:$0xff] }
 0x1e3   : > { %v2532_v18 = vpop.eup %2531  ;;  %2181 = vmatmul.mubr.f32.vlgmr.msra.gmra.mxu1 %v3434_v3  ;;  %2073 = vmatprep.mubr.f32.mxu0 %v1470_v51  ;;  %v1469_v53 = vmul.f32 %v1405_v29, %v957_v54  ;;  %v966_v34 = vmul.f32 0.5, %v3287_v13  ;;  %v1414_v36 = vadd.f32 1.0, %v2530_v52  ;;  %2557 = vtanh.f32 %v3491_v62  ;;  %v3696_v51 = vld [vmem:[#allocation12_spill] sm:$0xff] }
 0x1e4   : > { %v2534_v61 = vpop.eup %2533  ;;  %2186 = vmatprep.mubr.f32.mxu1 %v1472_v15  ;;  %v968_v17 = vmul.f32 0.5, %v3289_v9  ;;  %v1416_v30 = vadd.f32 1.0, %v2532_v18  ;;  %v965_v19 = vmul.f32 0.5, %v3281_v4  ;;  %2559 = vtanh.f32 %v3500_v44 }
 0x1e5   : > { %v2536_v55 = vpop.eup %2535  ;;  %2074 = vmatmul.mubr.f32.gmra.mxu0 %v1469_v53  ;;  %v1471_v10 = vmul.f32 %v1407_v46, %v959_v63  ;;  %v1478_v3 = vmul.f32 %v1414_v36, %v966_v34  ;;  %v1413_v23 = vadd.f32 1.0, %v2534_v61  ;;  %2561 = vtanh.f32 %v1318_v0  ;;  %v3697_v53 = vld [vmem:[#allocation13_spill] sm:$0xff] }
 0x1e6   : > { %v2538_v45 = vpop.eup %2537  ;;  %v1480_v13 = vmul.f32 %v1416_v30, %v968_v17  ;;  %v967_v24 = vmul.f32 0.5, %v3283_v7  ;;  %v1415_v62 = vadd.f32 1.0, %v2536_v55  ;;  %2563 = vtanh.f32 %v1320_v31 }
 0x1e7   : > { %v2540_v8 = vpop.eup %2539  ;;  %2187 = vmatmul.mubr.f32.gmra.mxu1 %v1471_v10  ;;  %2079 = vmatprep.mubr.f32.mxu0 %v1478_v3  ;;  %v1477_v9 = vmul.f32 %v1413_v23, %v965_v19  ;;  %v974_v4 = vmul.f32 0.5, %v3300_v57  ;;  %v1422_v26 = vadd.f32 1.0, %v2538_v45  ;;  %2565 = vtanh.f32 %v3506_v2 }
 0x1e8   : > { %v2542_v44 = vpop.eup %2541  ;;  %2192 = vmatprep.mubr.f32.mxu1 %v1480_v13  ;;  %v976_v5 = vmul.f32 0.5, %v3302_v41  ;;  %v1424_v0 = vadd.f32 1.0, %v2540_v8  ;;  %v973_v6 = vmul.f32 0.5, %v3293_v21  ;;  %2567 = vtanh.f32 %v3508_v58 }
 0x1e9   : > { %v2544_v7 = vpop.eup %2543  ;;  %2080 = vmatmul.mubr.f32.gmra.mxu0 %v1477_v9  ;;  %v1479_v31 = vmul.f32 %v1415_v62, %v967_v24  ;;  %v1486_v43 = vmul.f32 %v1422_v26, %v974_v4  ;;  %v1421_v50 = vadd.f32 1.0, %v2542_v44  ;;  %2569 = vtanh.f32 %v1326_v48 }
 0x1ea   : > { %v2546_v25 = vpop.eup %2545  ;;  %v1488_v57 = vmul.f32 %v1424_v0, %v976_v5  ;;  %v975_v60 = vmul.f32 0.5, %v3295_v27  ;;  %v1423_v2 = vadd.f32 1.0, %v2544_v7  ;;  %2571 = vtanh.f32 %v1328_v11 }
 0x1eb   : > { %v2548_v14 = vpop.eup %2547  ;;  %2193 = vmatmul.mubr.f32.gmra.mxu1 %v1479_v31  ;;  %2085 = vmatprep.mubr.f32.mxu0 %v1486_v43  ;;  %v1485_v41 = vmul.f32 %v1421_v50, %v973_v6  ;;  %v982_v21 = vmul.f32 0.5, %v3694_v35  ;;  %v1430_v49 = vadd.f32 1.0, %v2546_v25  ;;  %2573 = vtanh.f32 %v3517_v40 }
 0x1ec   : > { %v2550_v58 = vpop.eup %2549  ;;  %2198 = vmatprep.mubr.f32.mxu1 %v1488_v57  ;;  %v984_v54 = vmul.f32 0.5, %v3695_v42  ;;  %v1432_v48 = vadd.f32 1.0, %v2548_v14  ;;  %2575 = vtanh.f32 %v3523_v33  ;;  %v1487_v27 = vmul.f32 %v1423_v2, %v975_v60 }
 0x1ed   : > { %v2552_v28 = vpop.eup %2551  ;;  %2086 = vmatmul.mubr.f32.gmra.mxu0 %v1485_v41  ;;  %v1494_v11 = vmul.f32 %v1430_v49, %v982_v21  ;;  %v981_v29 = vmul.f32 0.5, %v3696_v51  ;;  %v1429_v52 = vadd.f32 1.0, %v2550_v58  ;;  %v983_v34 = vmul.f32 0.5, %v3697_v53 }
 0x1ee   : > { %v2554_v15 = vpop.eup %2553  ;;  %v1496_v63 = vmul.f32 %v1432_v48, %v984_v54  ;;  %v1431_v46 = vadd.f32 1.0, %v2552_v28  ;;  %v990_v36 = vmul.f32 0.5, %v3356_v59  ;;  %v992_v17 = vmul.f32 0.5, %v3366_v1 }
 0x1ef   : > { %v2556_v18 = vpop.eup %2555  ;;  %2199 = vmatmul.mubr.f32.gmra.mxu1 %v1487_v27  ;;  %2091 = vmatprep.mubr.f32.mxu0 %v1494_v11  ;;  %v1493_v40 = vmul.f32 %v1429_v52, %v981_v29  ;;  %v1438_v61 = vadd.f32 1.0, %v2554_v15  ;;  %v989_v3 = vmul.f32 0.5, %v3333_v20  ;;  %v991_v8 = vmul.f32 0.5, %v3345_v56 }
 0x1f0   : > { %v2558_v33 = vpop.eup %2557  ;;  %2204 = vmatprep.mubr.f32.mxu1 %v1496_v63  ;;  %v1440_v30 = vadd.f32 1.0, %v2556_v18  ;;  %v1495_v55 = vmul.f32 %v1431_v46, %v983_v34  ;;  %v998_v9 = vmul.f32 0.5, %v3401_v38  ;;  %v1000_v26 = vmul.f32 0.5, %v3413_v32 }
 0x1f1   : > { %v2560_v19 = vpop.eup %2559  ;;  %2092 = vmatmul.mubr.f32.gmra.mxu0 %v1493_v40  ;;  %v1502_v10 = vmul.f32 %v1438_v61, %v990_v36  ;;  %v1437_v23 = vadd.f32 1.0, %v2558_v33  ;;  %v997_v6 = vmul.f32 0.5, %v3378_v22  ;;  %v999_v38 = vmul.f32 0.5, %v3390_v37 }
 0x1f2   : > { %v2562_v45 = vpop.eup %2561  ;;  %v1504_v13 = vmul.f32 %v1440_v30, %v992_v17  ;;  %v1439_v24 = vadd.f32 1.0, %v2560_v19  ;;  %v1006_v57 = vmul.f32 0.5, %v3450_v39  ;;  %v1008_v2 = vmul.f32 0.5, %v3461_v16 }
 0x1f3   : > { %v2564_v62 = vpop.eup %2563  ;;  %2205 = vmatmul.mubr.f32.gmra.mxu1 %v1495_v55  ;;  %2097 = vmatprep.mubr.f32.mxu0 %v1502_v10  ;;  %v1501_v59 = vmul.f32 %v1437_v23, %v989_v3  ;;  %v1446_v1 = vadd.f32 1.0, %v2562_v45  ;;  %v1005_v21 = vmul.f32 0.5, %v3426_v12  ;;  %v1007_v39 = vmul.f32 0.5, %v3439_v47 }
 0x1f4   : > { %v2566_v4 = vpop.eup %2565  ;;  %2210 = vmatprep.mubr.f32.mxu1 %v1504_v13  ;;  %v1448_v44 = vadd.f32 1.0, %v2564_v62  ;;  %v1503_v20 = vmul.f32 %v1439_v24, %v991_v8 }
 0x1f5   : > { %v2568_v5 = vpop.eup %2567  ;;  %2098 = vmatmul.mubr.f32.gmra.mxu0 %v1501_v59  ;;  %v1510_v0 = vmul.f32 %v1446_v1, %v998_v9  ;;  %v1445_v7 = vadd.f32 1.0, %v2566_v4 }
 0x1f6   : > { %v2570_v31 = vpop.eup %2569  ;;  %v1512_v43 = vmul.f32 %v1448_v44, %v1000_v26  ;;  %v1447_v50 = vadd.f32 1.0, %v2568_v5 }
 0x1f7   : > { %v2572_v25 = vpop.eup %2571  ;;  %2211 = vmatmul.mubr.f32.gmra.mxu1 %v1503_v20  ;;  %2103 = vmatprep.mubr.f32.mxu0 %v1510_v0  ;;  %v1509_v56 = vmul.f32 %v1445_v7, %v997_v6  ;;  %v1454_v32 = vadd.f32 1.0, %v2570_v31 }
 0x1f8   : > { %v2574_v60 = vpop.eup %2573  ;;  %2216 = vmatprep.mubr.f32.mxu1 %v1512_v43  ;;  %v1456_v14 = vadd.f32 1.0, %v2572_v25  ;;  %v1511_v22 = vmul.f32 %v1447_v50, %v999_v38 }
 0x1f9   : > { %v2576_v41 = vpop.eup %2575  ;;  %2104 = vmatmul.mubr.f32.gmra.mxu0 %v1509_v56  ;;  %v1518_v35 = vmul.f32 %v1454_v32, %v1006_v57  ;;  %v1453_v49 = vadd.f32 1.0, %v2574_v60 }
 0x1fa   : > { %v1520_v58 = vmul.f32 %v1456_v14, %v1008_v2  ;;  %v1455_v42 = vadd.f32 1.0, %v2576_v41 }
 0x1fb   : > { %2217 = vmatmul.mubr.f32.gmra.mxu1 %v1511_v22  ;;  %2109 = vmatprep.mubr.f32.mxu0 %v1518_v35  ;;  %v1517_v37 = vmul.f32 %v1453_v49, %v1005_v21 }
 0x1fc   : > { %2222 = vmatprep.mubr.f32.mxu1 %v1520_v58  ;;  %v1519_v54 = vmul.f32 %v1455_v42, %v1007_v39 }
 0x1fd   : > { %2110 = vmatmul.mubr.f32.gmra.mxu0 %v1517_v37 }
 0x1ff   : > { %2223 = vmatmul.mubr.f32.gmra.mxu1 %v1519_v54 }
 0x23b   : > { %v1843_v16 = vpop.f32.mrf.mxu0 }
 0x23d   : > { %v1845_v28 = vpop.f32.mrf.mxu0 }
 0x23e   : > { %v1956_v48 = vpop.f32.mrf.mxu1 }
 0x23f   : > { %v1957_v59 = vadd.f32 %v1956_v48, %v1843_v16 }
 0x240   : > { %v1958_v27 = vpop.f32.mrf.mxu1 }
 0x241   : > { %v1959_v1 = vadd.f32 %v1958_v27, %v1845_v28 }
 0x249   : > { %v1849_v11 = vpop.f32.mrf.mxu0 }
 0x24b   : > { %v1851_v29 = vpop.f32.mrf.mxu0 }
 0x256   : > { %v1962_v51 = vpop.f32.mrf.mxu1 }
 0x257   : > { %v1963_v5 = vadd.f32 %v1962_v51, %v1849_v11 }
 0x258   : > { %v1964_v12 = vpop.f32.mrf.mxu1 }
 0x259   : > { %v1965_v31 = vadd.f32 %v1964_v12, %v1851_v29 }
 0x25e   : > { %v1855_v52 = vpop.f32.mrf.mxu0 }
 0x260   : > { %v1968_v15 = vpop.f32.mrf.mxu1  ;;  %v1857_v63 = vpop.f32.mrf.mxu0 }
 0x261   : > { %v1969_v38 = vadd.f32 %v1968_v15, %v1855_v52 }
 0x262   : > { %v1970_v46 = vpop.f32.mrf.mxu1  ;;  %v1861_v18 = vpop.f32.mrf.mxu0 }
 0x263   : > { %v1971_v14 = vadd.f32 %v1970_v46, %v1857_v63 }
 0x264   : > { %v1974_v40 = vpop.f32.mrf.mxu1  ;;  %v1863_v53 = vpop.f32.mrf.mxu0 }
 0x265   : > { %v1975_v49 = vadd.f32 %v1974_v40, %v1861_v18 }
 0x266   : > { %v1976_v47 = vpop.f32.mrf.mxu1  ;;  %v1867_v34 = vpop.f32.mrf.mxu0 }
 0x267   : > { %v1977_v54 = vadd.f32 %v1976_v47, %v1863_v53 }
 0x268   : > { %v1980_v36 = vpop.f32.mrf.mxu1  ;;  %v1869_v61 = vpop.f32.mrf.mxu0 }
 0x269   : > { %v1981_v11 = vadd.f32 %v1980_v36, %v1867_v34 }
 0x26a   : > { %v1982_v33 = vpop.f32.mrf.mxu1  ;;  %v3561_v17 = vpop.f32.mrf.mxu0 }
 0x26b   : > { %v1983_v15 = vadd.f32 %v1982_v33, %v1869_v61 }
 0x26c   : > { %v3563_v30 = vpop.f32.mrf.mxu1  ;;  %v3565_v19 = vpop.f32.mrf.mxu0 }
 0x26d   : > { %v1987_v53 = vadd.f32 %v3563_v30, %v3561_v17 }
 0x26e   : > { %v3567_v55 = vpop.f32.mrf.mxu1  ;;  %v3569_v10 = vpop.f32.mrf.mxu0 }
 0x270   : > { %v3571_v3 = vpop.f32.mrf.mxu1  ;;  %v3573_v23 = vpop.f32.mrf.mxu0 }
 0x272   : > { %v3575_v45 = vpop.f32.mrf.mxu1  ;;  %v3577_v13 = vpop.f32.mrf.mxu0 }
 0x274   : > { %v3579_v24 = vpop.f32.mrf.mxu1  ;;  %v3581_v62 = vpop.f32.mrf.mxu0 }
 0x276   : > { %v3583_v8 = vpop.f32.mrf.mxu1 }
 0x2a1   : > { %v2069_v9 = vpop.f32.mrf.mxu0 }
 0x2a2   : > { %v2070_v4 = vadd.f32 %v2069_v9, %v1957_v59  ;;  %v1989_v9 = vadd.f32 %v3567_v55, %v3565_v19 }
 0x2a3   : > { %v2182_v26 = vpop.f32.mrf.mxu1  ;;  %v2071_v44 = vpop.f32.mrf.mxu0 }
 0x2a4   : > { %v2183_v20 = vadd.f32 %v2182_v26, %v2070_v4  ;;  %v2072_v0 = vadd.f32 %v2071_v44, %v1959_v1  ;;  %v1993_v26 = vadd.f32 %v3571_v3, %v3569_v10  ;;  %v1999_v10 = vadd.f32 %v3579_v24, %v3577_v13 }
 0x2a5   : > { %v2184_v6 = vpop.f32.mrf.mxu1  ;;  %v2075_v7 = vpop.f32.mrf.mxu0 }
 0x2a6   : > { %2229 = vst [vmem:[%s3587_s18] sm:$0xff] %v2183_v20  ;;  %v2185_v43 = vadd.f32 %v2184_v6, %v2072_v0  ;;  %v2076_v50 = vadd.f32 %v2075_v7, %v1963_v5  ;;  %v1995_v20 = vadd.f32 %v3575_v45, %v3573_v23  ;;  %v2001_v23 = vadd.f32 %v3583_v8, %v3581_v62 }
 0x2a7   : > { %v2188_v25 = vpop.f32.mrf.mxu1  ;;  %v2077_v56 = vpop.f32.mrf.mxu0 }
 0x2a8   : > { %2230 = vst [vmem:[%s3587_s18 + $0x8] sm:$0xff] %v2185_v43  ;;  %v2189_v57 = vadd.f32 %v2188_v25, %v2076_v50  ;;  %v2078_v32 = vadd.f32 %v2077_v56, %v1965_v31 }
 0x2a9   : > { %v2190_v60 = vpop.f32.mrf.mxu1  ;;  %v2081_v2 = vpop.f32.mrf.mxu0 }
 0x2aa   : > { %2231 = vst [vmem:[%s3587_s18 + $0x10] sm:$0xff] %v2189_v57  ;;  %v2191_v41 = vadd.f32 %v2190_v60, %v2078_v32  ;;  %v2082_v22 = vadd.f32 %v2081_v2, %v1969_v38 }
 0x2ab   : > { %v2194_v35 = vpop.f32.mrf.mxu1  ;;  %v2083_v21 = vpop.f32.mrf.mxu0 }
 0x2ac   : > { %2232 = vst [vmem:[%s3587_s18 + $0x18] sm:$0xff] %v2191_v41  ;;  %v2195_v58 = vadd.f32 %v2194_v35, %v2082_v22  ;;  %v2084_v42 = vadd.f32 %v2083_v21, %v1971_v14 }
 0x2ad   : > { %v2196_v37 = vpop.f32.mrf.mxu1  ;;  %v2087_v39 = vpop.f32.mrf.mxu0 }
 0x2ae   : > { %2233 = vst [vmem:[%s3587_s18 + $0x20] sm:$0xff] %v2195_v58  ;;  %v2197_v16 = vadd.f32 %v2196_v37, %v2084_v42  ;;  %v2088_v48 = vadd.f32 %v2087_v39, %v1975_v49 }
 0x2af   : > { %v2200_v28 = vpop.f32.mrf.mxu1  ;;  %v2089_v27 = vpop.f32.mrf.mxu0 }
 0x2b0   : > { %2234 = vst [vmem:[%s3587_s18 + $0x28] sm:$0xff] %v2197_v16  ;;  %v2201_v51 = vadd.f32 %v2200_v28, %v2088_v48  ;;  %v2090_v29 = vadd.f32 %v2089_v27, %v1977_v54 }
 0x2b1   : > { %v2202_v12 = vpop.f32.mrf.mxu1  ;;  %v2093_v52 = vpop.f32.mrf.mxu0 }
 0x2b2   : > { %2235 = vst [vmem:[%s3587_s18 + $0x30] sm:$0xff] %v2201_v51  ;;  %v2203_v63 = vadd.f32 %v2202_v12, %v2090_v29  ;;  %v2094_v46 = vadd.f32 %v2093_v52, %v1981_v11 }
 0x2b3   : > { %v2206_v18 = vpop.f32.mrf.mxu1  ;;  %v2095_v40 = vpop.f32.mrf.mxu0 }
 0x2b4   : > { %2236 = vst [vmem:[%s3587_s18 + $0x38] sm:$0xff] %v2203_v63  ;;  %v2207_v47 = vadd.f32 %v2206_v18, %v2094_v46  ;;  %v2096_v59 = vadd.f32 %v2095_v40, %v1983_v15 }
 0x2b5   : > { %v2208_v34 = vpop.f32.mrf.mxu1  ;;  %v2099_v36 = vpop.f32.mrf.mxu0 }
 0x2b6   : > { %2237 = vst [vmem:[%s3587_s18 + $0x40] sm:$0xff] %v2207_v47  ;;  %v2209_v61 = vadd.f32 %v2208_v34, %v2096_v59  ;;  %v2100_v33 = vadd.f32 %v2099_v36, %v1987_v53 }
 0x2b7   : > { %v2212_v1 = vpop.f32.mrf.mxu1  ;;  %v2101_v4 = vpop.f32.mrf.mxu0 }
 0x2b8   : > { %2238 = vst [vmem:[%s3587_s18 + $0x48] sm:$0xff] %v2209_v61  ;;  %v2213_v17 = vadd.f32 %v2212_v1, %v2100_v33  ;;  %v2102_v30 = vadd.f32 %v2101_v4, %v1989_v9 }
 0x2b9   : > { %v2214_v44 = vpop.f32.mrf.mxu1  ;;  %v2105_v5 = vpop.f32.mrf.mxu0 }
 0x2ba   : > { %2239 = vst [vmem:[%s3587_s18 + $0x50] sm:$0xff] %v2213_v17  ;;  %v2215_v19 = vadd.f32 %v2214_v44, %v2102_v30  ;;  %v2106_v55 = vadd.f32 %v2105_v5, %v1993_v26 }
 0x2bb   : > { %v2218_v0 = vpop.f32.mrf.mxu1  ;;  %v2107_v6 = vpop.f32.mrf.mxu0 }
 0x2bc   : > { %2240 = vst [vmem:[%s3587_s18 + $0x58] sm:$0xff] %v2215_v19  ;;  %v2219_v3 = vadd.f32 %v2218_v0, %v2106_v55  ;;  %v2108_v7 = vadd.f32 %v2107_v6, %v1995_v20 }
 0x2bd   : > { %v2220_v31 = vpop.f32.mrf.mxu1  ;;  %v2111_v43 = vpop.f32.mrf.mxu0 }
 0x2be   : > { %2241 = vst [vmem:[%s3587_s18 + $0x60] sm:$0xff] %v2219_v3  ;;  %v2221_v45 = vadd.f32 %v2220_v31, %v2108_v7  ;;  %v2112_v50 = vadd.f32 %v2111_v43, %v1999_v10 }
 0x2bf   : > { %v2224_v25 = vpop.f32.mrf.mxu1  ;;  %v2113_v56 = vpop.f32.mrf.mxu0 }
 0x2c0   : > { %2242 = vst [vmem:[%s3587_s18 + $0x68] sm:$0xff] %v2221_v45  ;;  %v2225_v13 = vadd.f32 %v2224_v25, %v2112_v50  ;;  %v2114_v24 = vadd.f32 %v2113_v56, %v2001_v23 }
 0x2c1   : > { %v2226_v38 = vpop.f32.mrf.mxu1 }
 0x2c2   : > { %2243 = vst [vmem:[%s3587_s18 + $0x70] sm:$0xff] %v2225_v13  ;;  %v2227_v62 = vadd.f32 %v2226_v38, %v2114_v24 }
 0x2c4   : > { %2244 = vst [vmem:[%s3587_s18 + $0x78] sm:$0xff] %v2227_v62 }
 0x2c5   : > { %2670 = shalt.err (!%p2667_p9)
}
 0x2c6   : > { %s2671_s22 = scalar_lea.hbm %s3620_s29, 2048  ;;  %s2675_s28 = scalar_lea.hbm %s3670_s3, 4096 }
 0x2c7   : > { %p2672_p13 = scmp.ne.s32.totalorder %s3620_s29, %s2671_s22  ;;  %p2676_p4 = scmp.lt.s32.totalorder %s3620_s29, %s3670_s3 }
 0x2c8   : > { %p2677_p8 = scmp.lt.s32.totalorder %s2675_s28, %s2671_s22 }
 0x2c9   : > { %p2673_p5 = pnand %p2672_p13, %p3698_p10 }
 0x2ca   : > { %p2678_p7 = por %p2677_p8, %p2676_p4 }
 0x2cb   : > { %p2674_p0 = pneg %p2673_p5 }
 0x2cd   : > { %p2679_p11 = pnand %p2678_p7, %p2674_p0 }
 0x2cf   : > { %2682 = shalt.err (!%p2679_p11)
}
 0x2d0   : > { %s2735_s30 = smov 256   ;;  %s2736_s18 = smov 16  }
 0x2d1   : > { %2386 = dma.vmem_to_hbm [thread:$0]  (%p3698_p10), %s3622_s5, 2048, %s3620_s29, %s2246_s16, %s2735_s30, %s2735_s30, %s2736_s18  }
 0x2d2 PF: > { %s2275_s20 = sand.u32 1, %s2713_s12   ;;  %p3699_p1 = scmp.ne.s32.totalorder %s3680_s19, 0 }
 0x2d3   : > { %p3700_p2 = scmp.ge.s32.totalorder %s2725_s15, 2  ;;  %s2276_s6 = scalar_lea.sflag [#allocation4], %s2275_s20 }
 0x2d5   : > { %p2400_p6 = pnand %p3700_p2, %p3699_p1 }
 0x2d7   : > { %p2401_p12 = pneg %p2400_p6 }
 0x2d9   : > { %2708 = dma.done.wait (%p2401_p12), %s2276_s6, 2048  }
 0x2da   : > { %2710 = vsyncadd (%p2401_p12), %s2276_s6, 4294965248  ;;  %p17_p3 = scmp.ge.s32.totalorder %s2832_s9, 4   ;;  %s3701_s12 = smov %s2717_s13 }
 0x2db   : > { %s3702_s13 = smov %s2721_s14  ;;  %s3703_s14 = smov %s2841_s17 }
 0x2dc   : > { %s3704_s15 = smov %s2832_s9  ;;  %19 = sbr.rel (!%p17_p3) target bundleno = 6 (0x6), region = 85 }
 0x2e1   :  { %2281 = vsyncpa [#allocation3], 1 }
 0x2e2   :  { %2283 = vsyncpa [#allocation3 + $0x1], 1 }
 0x2e3   :  { %2284 = vsyncpa [#allocation6], 1 }
 0x2e4   :  { %2285 = vsyncpa [#allocation4], 1 }
 0x2e5   :  { %2287 = vsyncpa [#allocation4 + $0x1], 1 }

</bundles_post_ra>
